<compile_context>
chip_gen: v7x
topology: tpu7x:2x2x1
jax: 0.10.0
libtpu: 0.0.40
codegen_flags: <defaults>
</compile_context>

<pallas_src>
import jax
import jax.numpy as jnp
from jax.experimental import pallas as pl
from jax.experimental.pallas import tpu as pltpu


def _round_up(x, m):
    return (x + m - 1) // m * m


def _fold_bn(gamma, beta, running_mean, running_var, eps=1e-5):
    scale = gamma / jnp.sqrt(running_var + eps)
    shift = beta - running_mean * scale
    return scale, shift


def _vmem_tile_bytes(rows, cols, itemsize):
    """(8,128)-padded VMEM footprint of a (rows, cols) tile."""
    return _round_up(max(rows, 1), 8) * _round_up(max(cols, 1), 128) * itemsize


def _tile_budget_bytes(TH, W, Cin, Cp, out_itemsize, mxu_itemsize):
    """Conservative per-step VMEM estimate for a TH-row tile."""
    Wp2, Hs = W + 2, TH + 2
    M2 = TH * Wp2
    M1 = _round_up(Hs * Wp2 + 2, 8)
    K1 = 9 * Cin + 1
    b = 0
    b += 2 * _vmem_tile_bytes(M1, K1, mxu_itemsize)       # streamed patch block (x2 buf)
    b += 2 * _vmem_tile_bytes(M2, Cp, out_itemsize)       # output block (x2 buf)
    b += _vmem_tile_bytes(M1, Cp, 4)                      # conv1 f32 result
    b += _vmem_tile_bytes(M1, Cp, mxu_itemsize)           # ReLU'd intermediate (MXU dtype)
    b += _vmem_tile_bytes(M2, Cp, 4)                      # conv2 f32 accumulator
    b += _vmem_tile_bytes(M2, Cp, mxu_itemsize)           # shifted-view staging slack
    b += 2 * _vmem_tile_bytes(K1, Cp, mxu_itemsize)       # w1 (double-buffered worst case)
    b += 2 * 9 * _vmem_tile_bytes(Cp, Cp, mxu_itemsize)   # w2 (double-buffered worst case)
    return b


def _pick_tile_rows(H, W, Cin, Cp, out_itemsize, mxu_itemsize, budget_bytes):
    """Largest divisor of H whose tile working set fits the VMEM budget."""
    for th in range(H, 0, -1):
        if H % th:
            continue
        if _tile_budget_bytes(th, W, Cin, Cp, out_itemsize, mxu_itemsize) <= budget_bytes:
            return th
    return 1


_VMEM_BUDGET = 28 << 20   # per-step working-set target; fits every generation incl. v7x


def double_conv_fused(x_nhwc, w1, b1, bn1, w2, b2, bn2, *,
                      mxu_dtype=jnp.bfloat16, core_parallel=False):
    """Fused (Conv3x3 pad=1 -> BN(eval) -> ReLU) x 2 as one pallas_call.

    x_nhwc: (N, H, W, Cin).  w1: (3,3,Cin,Cout) HWIO.  w2: (3,3,Cout,Cout) HWIO.
    bn1/bn2: (gamma, beta, running_mean, running_var), eval mode.
    mxu_dtype: dtype fed to the MXU.  bfloat16 (default) gives 2-3x matmul throughput and
        halves DMA bytes; compare against an f32 reference with ~5e-2 tolerance.  Use
        jnp.float32 for ~1e-3 agreement.
    core_parallel: set True on v7x (2 TensorCores) to split the grid across cores.
    """
    N, H, W, Cin = x_nhwc.shape
    Cout = w1.shape[-1]
    f32 = jnp.float32

    # Lane-dense (128) channel padding only pays off for wide layers; narrow layers keep
    # Cout (8-aligned) so conv2 FLOPs / output HBM bytes are not inflated.
    Cp = _round_up(Cout, 128) if Cout >= 128 else _round_up(Cout, 8)

    K1 = 9 * Cin + 1                 # 9 input taps + one "ones" tap carrying bias/shift
    Wp2 = W + 2                      # intermediate kept at padded width

    mxu_itemsize = jnp.dtype(mxu_dtype).itemsize
    out_itemsize = jnp.dtype(x_nhwc.dtype).itemsize
    TH = _pick_tile_rows(H, W, Cin, Cp, out_itemsize, mxu_itemsize, _VMEM_BUDGET)
    T = H // TH
    Hs = TH + 2                      # intermediate rows per tile (1-row halo each side)
    M2 = TH * Wp2                    # output rows per tile (2 junk cols per row)
    M1 = _round_up(Hs * Wp2 + 2, 8)  # +2 keeps conv2's shifted views in-bounds

    # ---- fold conv bias + eval-mode BN into the weights (wrapper-side, free) ----
    s1, t1 = _fold_bn(*bn1)
    t1 = b1 * s1 + t1                                     # conv1 bias folded into shift
    s2, t2 = _fold_bn(*bn2)
    t2 = b2 * s2 + t2
    w1s = (w1.astype(f32) * s1).reshape(9 * Cin, Cout)    # BN1 scale into weight columns
    w1aug = jnp.concatenate([w1s, t1[None, :].astype(f32)], axis=0)        # (K1, Cout)
    w1p = jnp.zeros((K1, Cp), f32).at[:, :Cout].set(w1aug).astype(mxu_dtype)
    w2s = w2.astype(f32) * s2                             # BN2 scale into weight columns
    w2p = (jnp.zeros((3, 3, Cp, Cp), f32).at[:, :, :Cout, :Cout].set(w2s)
           .astype(mxu_dtype).reshape(9, Cp, Cp))
    sh2 = jnp.zeros((1, Cp), f32).at[0, :Cout].set(t2.astype(f32))

    # ---- wrapper-side im2col for conv1 over the (H+2, W+2) intermediate grid ----
    # Grid position (r, c) is conv1 evaluated at image pixel (r-1, c-1); out-of-image
    # positions (conv2's zero padding) get all-zero rows *including* the ones tap, so the
    # kernel's ReLU(0) = 0 reproduces the padding exactly (no in-kernel masking needed).
    xp2 = jnp.pad(x_nhwc, ((0, 0), (2, 2), (2, 2), (0, 0))).astype(f32)   # (N, H+4, W+4, Cin)
    taps = jnp.concatenate(
        [xp2[:, dy:dy + H + 2, dx:dx + W + 2, :] for dy in range(3) for dx in range(3)],
        axis=-1)                                                          # (N, H+2, W+2, 9*Cin)
    ones = jnp.ones((N, H + 2, Wp2, 1), f32)
    patches = jnp.concatenate([taps, ones], axis=-1)                      # (N, H+2, W+2, K1)
    ry = jnp.arange(H + 2) - 1
    cx = jnp.arange(Wp2) - 1
    valid = (((ry >= 0) & (ry < H))[None, :, None, None]
             & ((cx >= 0) & (cx < W))[None, None, :, None])
    patches = jnp.where(valid, patches, 0.0).astype(mxu_dtype)

    # Per-tile slabs with the 1-row halo duplicated, so each grid step streams a
    # non-overlapping block and the whole image is never VMEM-resident.
    slabs = jnp.stack([patches[:, t * TH:t * TH + Hs] for t in range(T)], axis=1)
    p1 = slabs.reshape(N * T, Hs * Wp2, K1)
    p1 = jnp.pad(p1, ((0, 0), (0, M1 - Hs * Wp2), (0, 0)))                # zero tail rows

    # ---- the fused kernel ----
    def kernel(p1_ref, w1_ref, w2_ref, sh2_ref, o_ref):
        # conv1 (+ folded bias/BN via the ones tap) + ReLU: one MXU matmul, f32 acc.
        z = jnp.dot(p1_ref[0], w1_ref[...], preferred_element_type=jnp.float32)
        z = jnp.maximum(z, 0.0).astype(w2_ref.dtype)             # (M1, Cp)

        # conv2: 9 (M2, Cp) @ (Cp, Cp) MXU matmuls on contiguous row-ranges of the
        # flattened intermediate (offset dy*(W+2)+dx).  No concats / masks; the two
        # wrap-around junk columns per row are discarded in the wrapper.
        acc = jnp.zeros((M2, Cp), jnp.float32)
        for k in range(9):
            dy, dx = divmod(k, 3)
            off = dy * Wp2 + dx
            acc = acc + jnp.dot(z[off:off + M2], w2_ref[k],
                                preferred_element_type=jnp.float32)

        y = jnp.maximum(acc + sh2_ref[...], 0.0)                 # folded bias/BN2 shift + ReLU
        o_ref[0] = y.astype(o_ref.dtype)

    need = _tile_budget_bytes(TH, W, Cin, Cp, out_itemsize, mxu_itemsize)
    vmem_limit = int(min(max(int(need * 1.4) + (4 << 20), 32 << 20), 50 << 20))
    dim_sem = (pltpu.CORE_PARALLEL if core_parallel else pltpu.PARALLEL,)

    out = pl.pallas_call(
        kernel,
        out_shape=jax.ShapeDtypeStruct((N * T, M2, Cp), x_nhwc.dtype),
        grid=(N * T,),
        in_specs=[
            # Streamed per-tile patch slab (double-buffered by the Pallas pipeline).
            pl.BlockSpec((1, M1, K1), lambda g: (g, 0, 0)),
            # Invariant operands: constant index_map => not re-DMA'd between steps.
            pl.BlockSpec((K1, Cp), lambda g: (0, 0)),
            pl.BlockSpec((9, Cp, Cp), lambda g: (0, 0, 0)),
            pl.BlockSpec((1, Cp), lambda g: (0, 0)),
        ],
        out_specs=pl.BlockSpec((1, M2, Cp), lambda g: (g, 0, 0)),
        compiler_params=pltpu.CompilerParams(
            dimension_semantics=dim_sem,
            vmem_limit_bytes=vmem_limit),
    )(p1, w1p, w2p, sh2)

    # Drop the 2 junk columns per row and the channel padding; restore (N, H, W, Cout).
    y = out.reshape(N, T, TH, Wp2, Cp)[:, :, :, :W, :Cout]
    return y.reshape(N, H, W, Cout)


class DoubleConvPallas:
    """DoubleConv: (Conv3x3 -> BN -> ReLU) x 2, BN in eval mode, one fused kernel."""

    def __init__(self, in_channels, out_channels, key):
        ks = jax.random.split(key, 8)
        f32 = jnp.float32
        # Conv weights stored as HWIO (3,3,Cin,Cout); PyTorch would be OIHW.
        self.w1 = 0.1 * jax.random.normal(ks[0], (3, 3, in_channels, out_channels), f32)
        self.b1 = 0.05 * jax.random.normal(ks[1], (out_channels,), f32)
        self.w2 = 0.1 * jax.random.normal(ks[2], (3, 3, out_channels, out_channels), f32)
        self.b2 = 0.05 * jax.random.normal(ks[3], (out_channels,), f32)
        # BatchNorm parameters / running stats (eval mode).
        self.g1 = jax.random.uniform(ks[4], (out_channels,), f32, 0.5, 1.5)
        self.be1 = 0.1 * jax.random.normal(ks[5], (out_channels,), f32)
        self.rm1 = 0.1 * jax.random.normal(ks[6], (out_channels,), f32)
        self.rv1 = jax.random.uniform(ks[7], (out_channels,), f32, 0.5, 1.5)
        self.g2 = jnp.ones((out_channels,), f32)
        self.be2 = jnp.zeros((out_channels,), f32)
        self.rm2 = jnp.zeros((out_channels,), f32)
        self.rv2 = jnp.ones((out_channels,), f32)

    def __call__(self, x_nchw, mxu_dtype=jnp.bfloat16, core_parallel=False):
        # Convert PyTorch NCHW input to the kernel's NHWC layout.
        x = jnp.transpose(x_nchw, (0, 2, 3, 1))
        y = double_conv_fused(
            x, self.w1, self.b1, (self.g1, self.be1, self.rm1, self.rv1),
            self.w2, self.b2, (self.g2, self.be2, self.rm2, self.rv2),
            mxu_dtype=mxu_dtype, core_parallel=core_parallel)
        # Return NCHW to match the PyTorch module's output convention.
        return jnp.transpose(y, (0, 3, 1, 2))


def _reference(model, x_nchw):
    """Pure-JAX reference (lax.conv, highest precision) for correctness checking."""
    x = jnp.transpose(x_nchw, (0, 2, 3, 1))

    def block(x, w, b, g, be, rm, rv):
        y = jax.lax.conv_general_dilated(
            x, w, window_strides=(1, 1), padding=((1, 1), (1, 1)),
            dimension_numbers=("NHWC", "HWIO", "NHWC"),
            precision=jax.lax.Precision.HIGHEST)
        y = y + b[None, None, None, :]
        s, sh = _fold_bn(g, be, rm, rv)
        return jnp.maximum(y * s[None, None, None, :] + sh[None, None, None, :], 0.0)

    y = block(x, model.w1, model.b1, model.g1, model.be1, model.rm1, model.rv1)
    y = block(y, model.w2, model.b2, model.g2, model.be2, model.rm2, model.rv2)
    return jnp.transpose(y, (0, 3, 1, 2))


if __name__ == "__main__":
    key = jax.random.PRNGKey(0)
    k_x, k_p = jax.random.split(key)

    N, Cin, Cout, H, W = 2, 4, 8, 16, 16
    x = jax.random.normal(k_x, (N, Cin, H, W), jnp.float32)   # NCHW, like PyTorch

    model = DoubleConvPallas(Cin, Cout, k_p)
    ref = _reference(model, x)

    # Default bf16 MXU path (activations quantized to bf16 -> ~1e-2-scale tolerance).
    out_bf16 = jax.block_until_ready(model(x))
    assert out_bf16.shape == (N, Cout, H, W), out_bf16.shape
    assert jnp.allclose(out_bf16, ref, atol=5e-2, rtol=5e-2), "bf16 path mismatch vs ref"

    # f32 MXU path for a tight check of the fused math.
    out_f32 = jax.block_until_ready(model(x, mxu_dtype=jnp.float32))
    assert jnp.allclose(out_f32, ref, atol=1e-3, rtol=1e-3), "f32 path mismatch vs ref"

    print("KERNEL_OK")
</pallas_src>

<mosaic_0001>
module attributes {stable_mosaic.version = 11 : i64} {
  func.func @kernel(%arg0: i32, %arg1: memref<1x328x37xbf16, #tpu.memory_space<vmem>>, %arg2: memref<37x8xbf16, #tpu.memory_space<vmem>>, %arg3: memref<9x8x8xbf16, #tpu.memory_space<vmem>>, %arg4: memref<1x8xf32, #tpu.memory_space<vmem>>, %arg5: memref<1x288x8xf32, #tpu.memory_space<vmem>>) attributes {dimension_semantics = [#tpu.dimension_semantics<parallel>], iteration_bounds = array<i64: 2>, scalar_prefetch = 0 : i64, scratch_operands = 0 : i64, tpu.core_type = #tpu.core_type<tc>, window_params = [{transform_indices = @transform_0, window_bounds = array<i64: 1, 328, 37>}, {pipeline_mode = #tpu.pipeline_mode<synchronous>, transform_indices = @transform_1, window_bounds = array<i64: 37, 8>}, {pipeline_mode = #tpu.pipeline_mode<synchronous>, transform_indices = @transform_2, window_bounds = array<i64: 9, 8, 8>}, {pipeline_mode = #tpu.pipeline_mode<synchronous>, transform_indices = @transform_3, window_bounds = array<i64: 1, 8>}, {transform_indices = @transform_4, window_bounds = array<i64: 1, 288, 8>}]} {
    %c0 = arith.constant 0 : index
    %c0_0 = arith.constant 0 : index
    %c0_1 = arith.constant 0 : index
    %0 = vector.load %arg1[%c0, %c0_0, %c0_1] : memref<1x328x37xbf16, #tpu.memory_space<vmem>>, vector<1x328x37xbf16>
    %1 = vector.shape_cast %0 : vector<1x328x37xbf16> to vector<328x37xbf16>
    %c0_2 = arith.constant 0 : index
    %c0_3 = arith.constant 0 : index
    %2 = vector.load %arg2[%c0_2, %c0_3] : memref<37x8xbf16, #tpu.memory_space<vmem>>, vector<37x8xbf16>
    %cst = arith.constant dense<0.000000e+00> : vector<328x8xf32>
    %3 = tpu.matmul %1, %2, %cst {dimension_numbers = #tpu.dot_dimension_numbers<[1], [0], [0], [1], [0, 0, 1, 1], [], []>} : vector<328x37xbf16>, vector<37x8xbf16>, vector<328x8xf32> -> vector<328x8xf32>
    %cst_4 = arith.constant 0.000000e+00 : f32
    %4 = vector.broadcast %cst_4 : f32 to vector<328x8xf32>
    %5 = arith.maximumf %3, %4 : vector<328x8xf32>
    %6 = arith.truncf %5 : vector<328x8xf32> to vector<328x8xbf16>
    %cst_5 = arith.constant 0.000000e+00 : f32
    %7 = vector.broadcast %cst_5 : f32 to vector<288x8xf32>
    %8 = vector.extract_strided_slice %6 {offsets = [0, 0], sizes = [288, 8], strides = [1, 1]} : vector<328x8xbf16> to vector<288x8xbf16>
    %c0_6 = arith.constant 0 : index
    %c0_7 = arith.constant 0 : index
    %c0_8 = arith.constant 0 : index
    %9 = vector.load %arg3[%c0_6, %c0_7, %c0_8] : memref<9x8x8xbf16, #tpu.memory_space<vmem>>, vector<1x8x8xbf16>
    %10 = vector.shape_cast %9 : vector<1x8x8xbf16> to vector<8x8xbf16>
    %cst_9 = arith.constant dense<0.000000e+00> : vector<288x8xf32>
    %11 = tpu.matmul %8, %10, %cst_9 {dimension_numbers = #tpu.dot_dimension_numbers<[1], [0], [0], [1], [0, 0, 1, 1], [], []>} : vector<288x8xbf16>, vector<8x8xbf16>, vector<288x8xf32> -> vector<288x8xf32>
    %12 = arith.addf %7, %11 : vector<288x8xf32>
    %13 = vector.extract_strided_slice %6 {offsets = [1, 0], sizes = [288, 8], strides = [1, 1]} : vector<328x8xbf16> to vector<288x8xbf16>
    %c1 = arith.constant 1 : index
    %c0_10 = arith.constant 0 : index
    %c0_11 = arith.constant 0 : index
    %14 = vector.load %arg3[%c1, %c0_10, %c0_11] : memref<9x8x8xbf16, #tpu.memory_space<vmem>>, vector<1x8x8xbf16>
    %15 = vector.shape_cast %14 : vector<1x8x8xbf16> to vector<8x8xbf16>
    %cst_12 = arith.constant dense<0.000000e+00> : vector<288x8xf32>
    %16 = tpu.matmul %13, %15, %cst_12 {dimension_numbers = #tpu.dot_dimension_numbers<[1], [0], [0], [1], [0, 0, 1, 1], [], []>} : vector<288x8xbf16>, vector<8x8xbf16>, vector<288x8xf32> -> vector<288x8xf32>
    %17 = arith.addf %12, %16 : vector<288x8xf32>
    %18 = vector.extract_strided_slice %6 {offsets = [2, 0], sizes = [288, 8], strides = [1, 1]} : vector<328x8xbf16> to vector<288x8xbf16>
    %c2 = arith.constant 2 : index
    %c0_13 = arith.constant 0 : index
    %c0_14 = arith.constant 0 : index
    %19 = vector.load %arg3[%c2, %c0_13, %c0_14] : memref<9x8x8xbf16, #tpu.memory_space<vmem>>, vector<1x8x8xbf16>
    %20 = vector.shape_cast %19 : vector<1x8x8xbf16> to vector<8x8xbf16>
    %cst_15 = arith.constant dense<0.000000e+00> : vector<288x8xf32>
    %21 = tpu.matmul %18, %20, %cst_15 {dimension_numbers = #tpu.dot_dimension_numbers<[1], [0], [0], [1], [0, 0, 1, 1], [], []>} : vector<288x8xbf16>, vector<8x8xbf16>, vector<288x8xf32> -> vector<288x8xf32>
    %22 = arith.addf %17, %21 : vector<288x8xf32>
    %23 = vector.extract_strided_slice %6 {offsets = [18, 0], sizes = [288, 8], strides = [1, 1]} : vector<328x8xbf16> to vector<288x8xbf16>
    %c3 = arith.constant 3 : index
    %c0_16 = arith.constant 0 : index
    %c0_17 = arith.constant 0 : index
    %24 = vector.load %arg3[%c3, %c0_16, %c0_17] : memref<9x8x8xbf16, #tpu.memory_space<vmem>>, vector<1x8x8xbf16>
    %25 = vector.shape_cast %24 : vector<1x8x8xbf16> to vector<8x8xbf16>
    %cst_18 = arith.constant dense<0.000000e+00> : vector<288x8xf32>
    %26 = tpu.matmul %23, %25, %cst_18 {dimension_numbers = #tpu.dot_dimension_numbers<[1], [0], [0], [1], [0, 0, 1, 1], [], []>} : vector<288x8xbf16>, vector<8x8xbf16>, vector<288x8xf32> -> vector<288x8xf32>
    %27 = arith.addf %22, %26 : vector<288x8xf32>
    %28 = vector.extract_strided_slice %6 {offsets = [19, 0], sizes = [288, 8], strides = [1, 1]} : vector<328x8xbf16> to vector<288x8xbf16>
    %c4 = arith.constant 4 : index
    %c0_19 = arith.constant 0 : index
    %c0_20 = arith.constant 0 : index
    %29 = vector.load %arg3[%c4, %c0_19, %c0_20] : memref<9x8x8xbf16, #tpu.memory_space<vmem>>, vector<1x8x8xbf16>
    %30 = vector.shape_cast %29 : vector<1x8x8xbf16> to vector<8x8xbf16>
    %cst_21 = arith.constant dense<0.000000e+00> : vector<288x8xf32>
    %31 = tpu.matmul %28, %30, %cst_21 {dimension_numbers = #tpu.dot_dimension_numbers<[1], [0], [0], [1], [0, 0, 1, 1], [], []>} : vector<288x8xbf16>, vector<8x8xbf16>, vector<288x8xf32> -> vector<288x8xf32>
    %32 = arith.addf %27, %31 : vector<288x8xf32>
    %33 = vector.extract_strided_slice %6 {offsets = [20, 0], sizes = [288, 8], strides = [1, 1]} : vector<328x8xbf16> to vector<288x8xbf16>
    %c5 = arith.constant 5 : index
    %c0_22 = arith.constant 0 : index
    %c0_23 = arith.constant 0 : index
    %34 = vector.load %arg3[%c5, %c0_22, %c0_23] : memref<9x8x8xbf16, #tpu.memory_space<vmem>>, vector<1x8x8xbf16>
    %35 = vector.shape_cast %34 : vector<1x8x8xbf16> to vector<8x8xbf16>
    %cst_24 = arith.constant dense<0.000000e+00> : vector<288x8xf32>
    %36 = tpu.matmul %33, %35, %cst_24 {dimension_numbers = #tpu.dot_dimension_numbers<[1], [0], [0], [1], [0, 0, 1, 1], [], []>} : vector<288x8xbf16>, vector<8x8xbf16>, vector<288x8xf32> -> vector<288x8xf32>
    %37 = arith.addf %32, %36 : vector<288x8xf32>
    %38 = vector.extract_strided_slice %6 {offsets = [36, 0], sizes = [288, 8], strides = [1, 1]} : vector<328x8xbf16> to vector<288x8xbf16>
    %c6 = arith.constant 6 : index
    %c0_25 = arith.constant 0 : index
    %c0_26 = arith.constant 0 : index
    %39 = vector.load %arg3[%c6, %c0_25, %c0_26] : memref<9x8x8xbf16, #tpu.memory_space<vmem>>, vector<1x8x8xbf16>
    %40 = vector.shape_cast %39 : vector<1x8x8xbf16> to vector<8x8xbf16>
    %cst_27 = arith.constant dense<0.000000e+00> : vector<288x8xf32>
    %41 = tpu.matmul %38, %40, %cst_27 {dimension_numbers = #tpu.dot_dimension_numbers<[1], [0], [0], [1], [0, 0, 1, 1], [], []>} : vector<288x8xbf16>, vector<8x8xbf16>, vector<288x8xf32> -> vector<288x8xf32>
    %42 = arith.addf %37, %41 : vector<288x8xf32>
    %43 = vector.extract_strided_slice %6 {offsets = [37, 0], sizes = [288, 8], strides = [1, 1]} : vector<328x8xbf16> to vector<288x8xbf16>
    %c7 = arith.constant 7 : index
    %c0_28 = arith.constant 0 : index
    %c0_29 = arith.constant 0 : index
    %44 = vector.load %arg3[%c7, %c0_28, %c0_29] : memref<9x8x8xbf16, #tpu.memory_space<vmem>>, vector<1x8x8xbf16>
    %45 = vector.shape_cast %44 : vector<1x8x8xbf16> to vector<8x8xbf16>
    %cst_30 = arith.constant dense<0.000000e+00> : vector<288x8xf32>
    %46 = tpu.matmul %43, %45, %cst_30 {dimension_numbers = #tpu.dot_dimension_numbers<[1], [0], [0], [1], [0, 0, 1, 1], [], []>} : vector<288x8xbf16>, vector<8x8xbf16>, vector<288x8xf32> -> vector<288x8xf32>
    %47 = arith.addf %42, %46 : vector<288x8xf32>
    %48 = vector.extract_strided_slice %6 {offsets = [38, 0], sizes = [288, 8], strides = [1, 1]} : vector<328x8xbf16> to vector<288x8xbf16>
    %c8 = arith.constant 8 : index
    %c0_31 = arith.constant 0 : index
    %c0_32 = arith.constant 0 : index
    %49 = vector.load %arg3[%c8, %c0_31, %c0_32] : memref<9x8x8xbf16, #tpu.memory_space<vmem>>, vector<1x8x8xbf16>
    %50 = vector.shape_cast %49 : vector<1x8x8xbf16> to vector<8x8xbf16>
    %cst_33 = arith.constant dense<0.000000e+00> : vector<288x8xf32>
    %51 = tpu.matmul %48, %50, %cst_33 {dimension_numbers = #tpu.dot_dimension_numbers<[1], [0], [0], [1], [0, 0, 1, 1], [], []>} : vector<288x8xbf16>, vector<8x8xbf16>, vector<288x8xf32> -> vector<288x8xf32>
    %52 = arith.addf %47, %51 : vector<288x8xf32>
    %c0_34 = arith.constant 0 : index
    %c0_35 = arith.constant 0 : index
    %53 = vector.load %arg4[%c0_34, %c0_35] : memref<1x8xf32, #tpu.memory_space<vmem>>, vector<1x8xf32>
    %54 = vector.broadcast %53 : vector<1x8xf32> to vector<288x8xf32>
    %55 = arith.addf %52, %54 : vector<288x8xf32>
    %cst_36 = arith.constant 0.000000e+00 : f32
    %56 = vector.broadcast %cst_36 : f32 to vector<288x8xf32>
    %57 = arith.maximumf %55, %56 : vector<288x8xf32>
    %c0_37 = arith.constant 0 : index
    %c0_38 = arith.constant 0 : index
    %c0_39 = arith.constant 0 : index
    %58 = vector.load %arg5[%c0_37, %c0_38, %c0_39] : memref<1x288x8xf32, #tpu.memory_space<vmem>>, vector<1x288x8xf32>
    %59 = vector.shape_cast %58 : vector<1x288x8xf32> to vector<288x8xf32>
    %60 = vector.shape_cast %57 : vector<288x8xf32> to vector<1x288x8xf32>
    tpu.vector_store %arg5[%c0_37, %c0_38, %c0_39], %60 {strides = array<i32>} : memref<1x288x8xf32, #tpu.memory_space<vmem>>, vector<1x288x8xf32>,
    return
  }
  func.func @transform_0(%arg0: i32) -> (i32, i32, i32) {
    %c0_i32 = arith.constant 0 : i32
    %c0_i32_0 = arith.constant 0 : i32
    %c0_i32_1 = arith.constant 0 : i32
    return %arg0, %c0_i32, %c0_i32_0 : i32, i32, i32
  }
  func.func @transform_1(%arg0: i32) -> (i32, i32) {
    %c0_i32 = arith.constant 0 : i32
    %c0_i32_0 = arith.constant 0 : i32
    %c0_i32_1 = arith.constant 0 : i32
    return %c0_i32, %c0_i32_0 : i32, i32
  }
  func.func @transform_2(%arg0: i32) -> (i32, i32, i32) {
    %c0_i32 = arith.constant 0 : i32
    %c0_i32_0 = arith.constant 0 : i32
    %c0_i32_1 = arith.constant 0 : i32
    %c0_i32_2 = arith.constant 0 : i32
    return %c0_i32, %c0_i32_0, %c0_i32_1 : i32, i32, i32
  }
  func.func @transform_3(%arg0: i32) -> (i32, i32) {
    %c0_i32 = arith.constant 0 : i32
    %c0_i32_0 = arith.constant 0 : i32
    %c0_i32_1 = arith.constant 0 : i32
    return %c0_i32, %c0_i32_0 : i32, i32
  }
  func.func @transform_4(%arg0: i32) -> (i32, i32, i32) {
    %c0_i32 = arith.constant 0 : i32
    %c0_i32_0 = arith.constant 0 : i32
    %c0_i32_1 = arith.constant 0 : i32
    return %arg0, %c0_i32, %c0_i32_0 : i32, i32, i32
  }
}

</mosaic_0001>

<bundles_post_ra>
// kernel: tpu_custom_call.1
= control target key start
LH: loop header
LB: loop body
LE: loop exit
PB: predicated region body
PF: predicated region fallthrough
CT: control target
= control target key end

     0   :  { %s4800_s15 = smov 0   ;;  %s5815_s0 = inlined_call_operand.vmem [shape: bf16[2,328,37], index: 0, kind: input, shape index: {}]   ;;  %s5816_s1 = inlined_call_operand.vmem [shape: bf16[37,8], index: 1, kind: input, shape index: {}]   ;;  %s5817_s2 = inlined_call_operand.vmem [shape: bf16[9,8,8], index: 2, kind: input, shape index: {}]   ;;  %s5818_s3 = inlined_call_operand.vmem [shape: f32[1,8], index: 3, kind: input, shape index: {}]   ;;  %s5819_s4 = inlined_call_operand.vmem [shape: f32[2,288,8], index: 4, kind: output, shape index: {}]  }
   0x1 LB: > { %s3575_s16 = sadd.s32 4294967295, %s4770_s15   ;;  %p3579_p0 = scmp.ge.s32.totalorder %s4770_s15, 1  ;;  %s4770_s15 = sphi %s4800_s15, %s14_s15  }
   0x2   : > { %p162_p1 = scmp.lt.s32.totalorder %s4770_s15, 3 }
   0x4   : > { %p163_p2 = pnand %p3579_p0, %p162_p1 }
   0x6   : > { %166 = sbr.rel (%p163_p2) target bundleno = 981 (0x3d5), region = 36 }
   0xd   : > { %v4740_v0 = vld [vmem:[%s5816_s1] sm:$0xff]   ;;  %v4772_v1 = vmov 0.0   ;;  %v4741_v2 = vld [vmem:[%s5816_s1 + $0x8] sm:$0xff]   ;;  %vm427_vm0 = vcmask 1041408   ;;  %vm428_vm1 = vcmask 1042432   ;;  %p188_p3 = scmp.lt.s32.totalorder %s3575_s16, 1 }
   0xe   : > { %3995 = vmatprep.subr.bf16.mxu0 %v4772_v1  ;;  %v4742_v3 = vld [vmem:[%s5816_s1 + $0x10] ss:$0 sps:$4 sm:$0x77]   ;;  %v4773_v4 = vmov 65535   ;;  %vm4774_vm2 = vmmov 0   ;;  %vm363_vm3 = vcmask 302080  }
   0xf   : > { %3996 = vmatpush3.bf16.msra.mxu0 %v4740_v0  ;;  %v429_v5 = vsel %vm427_vm0, 4294967295, %v4773_v4  ;;  %4001 = vmatprep.mubr.msk.bf16.mxu0 %vm4774_vm2, %v4772_v1  ;;  %s5887_s16 = smov (!%p188_p3, %s3575_s16), 1  ;;  %v3627_v22 = vld [vmem:[%s5817_s2 + $0x4] sm:$0xf]  ;;  %vm903_vm4 = vcmask 1043456   ;;  %vm848_vm6 = vcmask 64512  }
  0x10   : > { %3997 = vmatprep.subr.bf16.mxu0 %v4772_v1  ;;  %v430_v6 = vsel %vm428_vm1, %v429_v5, 0  ;;  %s4727_s23 = smul.u32 164, %s5887_s16  ;;  %v905_v23 = vsel %vm903_vm4, %v3627_v22, 0  ;;  %v4912_v29 = vld [vmem:[%s5817_s2 + $0xc] sm:$0xf]  ;;  %vm1321_vm9 = vcmask 1046528  }
  0x11   : > { %v432_v7 = vand.u32 %v4742_v3, %v430_v6  ;;  %4721 = vmatprep.subr.msk.bf16.mxu1 %vm903_vm4, %v4912_v29  ;;  %v4920_v30 = vsel %vm903_vm4, %v4912_v29, 0  ;;  %v4932_v33 = vld [vmem:[%s5817_s2 + $0x10] sm:$0xf]  ;;  %vm699_vm5 = vsmask.f32 7424  ;;  %vm2210_vm10 = vcmask 1045504  }
  0x12   : > { %s4828_s26 = scalar_lea.vmem %s5815_s0, %s4727_s23  ;;  %4428 = vmatpush3.bf16.msra.mxu1 %v4920_v30  ;;  %vm1855_vm7 = vsmask.f32 6400  ;;  %vm2744_vm8 = vsmask.f32 5376  ;;  %vm3097_vm11 = vcmask 1044480   ;;  %s4728_s21 = smul.u32 288, %s5887_s16 }
  0x13   : > { %3998 = vmatpush3.bf16.msra.mxu0 %v4741_v2  ;;  %v4743_v8 = vld [vmem:[%s4828_s26] sm:$0xff]   ;;  %v4744_v9 = vld [vmem:[%s4828_s26 + $0x8] sm:$0xff]   ;;  %v4745_v10 = vld [vmem:[%s4828_s26 + $0x10] sm:$0xff]   ;;  %4722 = vmatprep.subr.msk.bf16.mxu1 %vm903_vm4, %v4932_v33 }
  0x14   : > { %3999 = vmatprep.subr.bf16.mxu0 %v4772_v1  ;;  %v4746_v11 = vld [vmem:[%s4828_s26 + $0x18] sm:$0xff]   ;;  %v4747_v12 = vld [vmem:[%s4828_s26 + $0x20] sm:$0xff]   ;;  %v4748_v13 = vld [vmem:[%s4828_s26 + $0x28] sm:$0xff]  }
  0x15   : > { %v4749_v14 = vld [vmem:[%s4828_s26 + $0x30] sm:$0xff]   ;;  %v4750_v15 = vld [vmem:[%s4828_s26 + $0x38] sm:$0xff]   ;;  %v4751_v16 = vld [vmem:[%s4828_s26 + $0x40] sm:$0xff]  }
  0x16   : > { %v4752_v17 = vld [vmem:[%s4828_s26 + $0x48] sm:$0xff]   ;;  %v4753_v18 = vld [vmem:[%s4828_s26 + $0x50] sm:$0xff]   ;;  %v4754_v19 = vld [vmem:[%s4828_s26 + $0x58] sm:$0xff]  }
  0x17   : > { %4000 = vmatpush3.bf16.msra.mxu0 %v432_v7  ;;  %v4755_v20 = vld [vmem:[%s4828_s26 + $0x60] sm:$0xff]   ;;  %v4756_v21 = vld [vmem:[%s4828_s26 + $0x68] sm:$0xff]   ;;  %v4757_v24 = vld [vmem:[%s4828_s26 + $0x70] sm:$0xff]  }
  0x18   : > { %4717 = vmatprep.subr.msk.bf16.mxu0 %vm903_vm4, %v3627_v22  ;;  %v4758_v25 = vld [vmem:[%s4828_s26 + $0x78] sm:$0xff]   ;;  %v4759_v26 = vld [vmem:[%s4828_s26 + $0x80] sm:$0xff]   ;;  %v4760_v27 = vld [vmem:[%s4828_s26 + $0x88] sm:$0xff]  }
  0x19   : > { %v4761_v28 = vld [vmem:[%s4828_s26 + $0x90] sm:$0xff]   ;;  %v4762_v31 = vld [vmem:[%s4828_s26 + $0x98] sm:$0xff]   ;;  %v4763_v32 = vld [vmem:[%s4828_s26 + $0xa0] ss:$0 sps:$4 sm:$0xff]   ;;  %s5675_s26 = scalar_lea.vmem %s5819_s4, %s4728_s21 }
  0x1a   : > { %4002 = vmatmul.mubr.msk.bf16.vlgmr.msra.gmra.mrb[0].mxu0 %vm363_vm3, %v4743_v8 }
  0x1b   : > { %4005 = vmatprep.mubr.msk.bf16.mxu0 %vm4774_vm2, %v4772_v1  ;;  %4086 = vmatpush3.bf16.msra.mxu0 %v905_v23  ;;  %v696_v23 = vld [vmem:[%s5817_s2] sm:$0xf] }
  0x1c   : > { %4718 = vmatprep.subr.msk.bf16.mxu0 %vm903_vm4, %v696_v23 }
  0x22   : > { %4006 = vmatmul.mubr.msk.bf16.gmra.mrb[4].mxu0 %vm363_vm3, %v4744_v9 }
  0x23   : > { %4009 = vmatprep.mubr.msk.bf16.mxu0 %vm4774_vm2, %v4772_v1 }
  0x2a   : > { %4010 = vmatmul.mubr.msk.bf16.gmra.mrb[8].mxu0 %vm363_vm3, %v4745_v10 }
  0x2b   : > { %4013 = vmatprep.mubr.msk.bf16.mxu0 %vm4774_vm2, %v4772_v1 }
  0x32   : > { %4014 = vmatmul.mubr.msk.bf16.gmra.mrb[12].mxu0 %vm363_vm3, %v4746_v11 }
  0x33   : > { %4017 = vmatprep.mubr.msk.bf16.mxu0 %vm4774_vm2, %v4772_v1 }
  0x3a   : > { %4018 = vmatmul.mubr.msk.bf16.gmra.mrb[16].mxu0 %vm363_vm3, %v4747_v12 }
  0x3b   : > { %4021 = vmatprep.mubr.msk.bf16.mxu0 %vm4774_vm2, %v4772_v1 }
  0x42   : > { %4022 = vmatmul.mubr.msk.bf16.gmra.mrb[20].mxu0 %vm363_vm3, %v4748_v13 }
  0x43   : > { %4025 = vmatprep.mubr.msk.bf16.mxu0 %vm4774_vm2, %v4772_v1 }
  0x4a   : > { %4026 = vmatmul.mubr.msk.bf16.gmra.mrb[24].mxu0 %vm363_vm3, %v4749_v14 }
  0x4b   : > { %4029 = vmatprep.mubr.msk.bf16.mxu0 %vm4774_vm2, %v4772_v1 }
  0x52   : > { %4030 = vmatmul.mubr.msk.bf16.gmra.mrb[28].mxu0 %vm363_vm3, %v4750_v15 }
  0x53   : > { %4033 = vmatprep.mubr.msk.bf16.mxu0 %vm4774_vm2, %v4772_v1 }
  0x5a   : > { %4034 = vmatmul.mubr.msk.bf16.gmra.mrb[32].mxu0 %vm363_vm3, %v4751_v16 }
  0x5b   : > { %4037 = vmatprep.mubr.msk.bf16.mxu0 %vm4774_vm2, %v4772_v1 }
  0x62   : > { %4038 = vmatmul.mubr.msk.bf16.gmra.mrb[36].mxu0 %vm363_vm3, %v4752_v17 }
  0x63   : > { %4041 = vmatprep.mubr.msk.bf16.mxu0 %vm4774_vm2, %v4772_v1 }
  0x6a   : > { %4042 = vmatmul.mubr.msk.bf16.gmra.mrb[40].mxu0 %vm363_vm3, %v4753_v18 }
  0x6b   : > { %4045 = vmatprep.mubr.msk.bf16.mxu0 %vm4774_vm2, %v4772_v1 }
  0x72   : > { %4046 = vmatmul.mubr.msk.bf16.gmra.mrb[44].mxu0 %vm363_vm3, %v4754_v19 }
  0x73   : > { %4049 = vmatprep.mubr.msk.bf16.mxu0 %vm4774_vm2, %v4772_v1 }
  0x7a   : > { %4050 = vmatmul.mubr.msk.bf16.gmra.mrb[48].mxu0 %vm363_vm3, %v4755_v20 }
  0x7b   : > { %4053 = vmatprep.mubr.msk.bf16.mxu0 %vm4774_vm2, %v4772_v1 }
  0x82   : > { %4054 = vmatmul.mubr.msk.bf16.gmra.mrb[52].mxu0 %vm363_vm3, %v4756_v21 }
  0x83   : > { %4057 = vmatprep.mubr.msk.bf16.mxu0 %vm4774_vm2, %v4772_v1 }
  0x8a   : > { %4058 = vmatmul.mubr.msk.bf16.gmra.mrb[56].mxu0 %vm363_vm3, %v4757_v24 }
  0x8b   : > { %4061 = vmatprep.mubr.msk.bf16.mxu0 %vm4774_vm2, %v4772_v1 }
  0x92   : > { %4062 = vmatmul.mubr.msk.bf16.gmra.mrb[60].mxu0 %vm363_vm3, %v4758_v25  ;;  %v1121_v25 = vsel %vm903_vm4, %v696_v23, 0 }
  0x93   : > { %4065 = vmatprep.mubr.msk.bf16.mxu0 %vm4774_vm2, %v4772_v1 }
  0x9a   : > { %4066 = vmatmul.mubr.msk.bf16.gmra.mrb[64].mxu0 %vm363_vm3, %v4759_v26 }
  0x9b   : > { %4069 = vmatprep.mubr.msk.bf16.mxu0 %vm4774_vm2, %v4772_v1 }
  0xa2   : > { %4070 = vmatmul.mubr.msk.bf16.gmra.mrb[68].mxu0 %vm363_vm3, %v4760_v27 }
  0xa3   : > { %4073 = vmatprep.mubr.msk.bf16.mxu0 %vm4774_vm2, %v4772_v1 }
  0xaa   : > { %4074 = vmatmul.mubr.msk.bf16.gmra.mrb[72].mxu0 %vm363_vm3, %v4761_v28 }
  0xab   : > { %4077 = vmatprep.mubr.msk.bf16.mxu0 %vm4774_vm2, %v4772_v1 }
  0xb2   : > { %4078 = vmatmul.mubr.msk.bf16.gmra.mrb[76].mxu0 %vm363_vm3, %v4762_v31 }
  0xb3   : > { %4081 = vmatprep.mubr.msk.bf16.mxu0 %vm4774_vm2, %v4772_v1 }
  0xba   : > { %4082 = vmatmul.mubr.msk.bf16.gmra.mrb[80].mxu0 %vm363_vm3, %v4763_v32 }
  0xed   : > { %v468_v34 = vpop.f32.mrb[0].mxu0 }
  0xee   : > { %v4003_v35 = vpop.f32.mrb[1].mxu0  ;;  %v634_v37 = vmax.f32 %v468_v34, 0.0 }
  0xef   : > { %v471_v36 = vpop.f32.mrb[2].mxu0 }
  0xf0   : > { %v635_v38 = vmax.f32 %v471_v36, 0.0  ;;  %v4004_v39 = vpop.f32.mrb[3].mxu0 }
  0xf2   : > { %v4936_v40 = vpack.c.bf16 %v635_v38, %v634_v37 }
  0xf4   : > { %v703_v43 = vshll.u32 %v4936_v40, 16  ;;  %v701_v50 = vshrl.u32 %v4936_v40, 16 }
  0xf5   : > { %v476_v41 = vpop.f32.mrb[4].mxu0 }
  0xf6   : > { %v4007_v42 = vpop.f32.mrb[5].mxu0  ;;  %v636_v45 = vmax.f32 %v476_v41, 0.0  ;;  %v705_v49 = vrot.slane %v703_v43, 1 }
  0xf7   : > { %v479_v44 = vpop.f32.mrb[6].mxu0 }
  0xf8   : > { %v637_v46 = vmax.f32 %v479_v44, 0.0  ;;  %v4008_v47 = vpop.f32.mrb[7].mxu0  ;;  %v706_v55 = vor.u32 %v705_v49, %v701_v50 }
  0xfa   : > { %v4939_v48 = vpack.c.bf16 %v637_v46, %v636_v45 }
  0xfc   : > { %v708_v51 = vshll.u32 %v4939_v48, 16  ;;  %v712_v52 = vshrl.u32 %v4939_v48, 16 }
  0xfd   : > { %v484_v53 = vpop.f32.mrb[8].mxu0 }
  0xfe   : > { %v4011_v54 = vpop.f32.mrb[9].mxu0  ;;  %v710_v56 = vrot.slane %v708_v51, 1  ;;  %v1856_v57 = vrot.slane %v712_v52, 1  ;;  %v1857_v58 = vrot.slane %v708_v51, 2  ;;  %v638_v60 = vmax.f32 %v484_v53, 0.0 }
  0xff   : > { %v487_v59 = vpop.f32.mrb[10].mxu0 }
 0x100   : > { %v639_v61 = vmax.f32 %v487_v59, 0.0  ;;  %v4012_v62 = vpop.f32.mrb[11].mxu0  ;;  %v711_v63 = vsel %vm699_vm5, %v706_v55, %v710_v56  ;;  %v1858_v0 = vor.u32 %v1857_v58, %v1856_v57  ;;  %v714_v5 = vor.u32 %v712_v52, %v710_v56 }
 0x101   : > { %4087 = vmatprep.mubr.msk.bf16.mxu0 %vm848_vm6, %v711_v63 }
 0x102   : > { %v4946_v1 = vpack.c.bf16 %v639_v61, %v638_v60 }
 0x104   : > { %v716_v2 = vshll.u32 %v4946_v1, 16  ;;  %v720_v3 = vshrl.u32 %v4946_v1, 16 }
 0x105   : > { %v492_v4 = vpop.f32.mrb[12].mxu0 }
 0x106   : > { %v4015_v6 = vpop.f32.mrb[13].mxu0  ;;  %v718_v7 = vrot.slane %v716_v2, 1  ;;  %v1859_v8 = vrot.slane %v720_v3, 1  ;;  %v1860_v9 = vrot.slane %v716_v2, 2  ;;  %v2745_v11 = vrot.slane %v720_v3, 2 }
 0x107   : > { %v495_v10 = vpop.f32.mrb[14].mxu0  ;;  %v2746_v12 = vrot.slane %v716_v2, 3  ;;  %v640_v13 = vmax.f32 %v492_v4, 0.0 }
 0x108   : > { %v641_v14 = vmax.f32 %v495_v10, 0.0  ;;  %v4016_v15 = vpop.f32.mrb[15].mxu0  ;;  %v719_v16 = vsel %vm699_vm5, %v714_v5, %v718_v7  ;;  %v1861_v17 = vor.u32 %v1860_v9, %v1859_v8  ;;  %v722_v27 = vor.u32 %v720_v3, %v718_v7 }
 0x109   : > { %4088 = vmatmul.mubr.msk.bf16.vlgmr.msra.gmra.mrb[84].mxu0 %vm848_vm6, %v719_v16  ;;  %v2747_v18 = vor.u32 %v2746_v12, %v2745_v11 }
 0x10a   : > { %v4952_v19 = vpack.c.bf16 %v641_v14, %v640_v13  ;;  %v4955_v20 = vsel %vm1855_vm7, %v1858_v0, %v1861_v17  ;;  %4124 = vmatpush3.bf16.msra.mxu0 %v1121_v25 }
 0x10c   : > { %v724_v21 = vshll.u32 %v4952_v19, 16  ;;  %v728_v22 = vshrl.u32 %v4952_v19, 16 }
 0x10d   : > { %v500_v24 = vpop.f32.mrb[16].mxu0 }
 0x10e   : > { %v4019_v26 = vpop.f32.mrb[17].mxu0  ;;  %v726_v28 = vrot.slane %v724_v21, 1  ;;  %v1863_v31 = vrot.slane %v728_v22, 1  ;;  %v1864_v32 = vrot.slane %v724_v21, 2  ;;  %v2748_v35 = vrot.slane %v728_v22, 2 }
 0x10f   : > { %v503_v34 = vpop.f32.mrb[18].mxu0  ;;  %v2749_v36 = vrot.slane %v724_v21, 3  ;;  %v642_v37 = vmax.f32 %v500_v24, 0.0 }
 0x110   : > { %v643_v38 = vmax.f32 %v503_v34, 0.0  ;;  %v4020_v39 = vpop.f32.mrb[19].mxu0  ;;  %v727_v41 = vsel %vm699_vm5, %v722_v27, %v726_v28  ;;  %v1865_v42 = vor.u32 %v1864_v32, %v1863_v31  ;;  %v730_v52 = vor.u32 %v728_v22, %v726_v28 }
 0x111   : > { %4091 = vmatprep.mubr.msk.bf16.mxu0 %vm848_vm6, %v727_v41  ;;  %v2750_v43 = vor.u32 %v2749_v36, %v2748_v35 }
 0x112   : > { %v4966_v44 = vpack.c.bf16 %v643_v38, %v642_v37  ;;  %v4969_v45 = vsel %vm1855_vm7, %v1861_v17, %v1865_v42 }
 0x113   : > { %v4972_v46 = vsel %vm2744_vm8, %v2747_v18, %v2750_v43 }
 0x114   : > { %5832 = vst [vmem:[#allocation2_spill] sm:$0xff] %v4972_v46  ;;  %v732_v47 = vshll.u32 %v4966_v44, 16  ;;  %v736_v49 = vshrl.u32 %v4966_v44, 16 }
 0x115   : > { %v508_v50 = vpop.f32.mrb[20].mxu0 }
 0x116   : > { %v4023_v51 = vpop.f32.mrb[21].mxu0  ;;  %v734_v53 = vrot.slane %v732_v47, 1  ;;  %v1867_v54 = vrot.slane %v736_v49, 1  ;;  %v1868_v55 = vrot.slane %v732_v47, 2  ;;  %v2752_v57 = vrot.slane %v736_v49, 2 }
 0x117   : > { %v511_v56 = vpop.f32.mrb[22].mxu0  ;;  %v644_v58 = vmax.f32 %v508_v50, 0.0  ;;  %v2753_v63 = vrot.slane %v732_v47, 3 }
 0x118   : > { %v645_v59 = vmax.f32 %v511_v56, 0.0  ;;  %v4024_v60 = vpop.f32.mrb[23].mxu0  ;;  %v735_v61 = vsel %vm699_vm5, %v730_v52, %v734_v53  ;;  %v1869_v62 = vor.u32 %v1868_v55, %v1867_v54  ;;  %v738_v9 = vor.u32 %v736_v49, %v734_v53 }
 0x119   : > { %4092 = vmatmul.mubr.msk.bf16.gmra.mrb[88].mxu0 %vm848_vm6, %v735_v61  ;;  %v2754_v3 = vor.u32 %v2753_v63, %v2752_v57 }
 0x11a   : > { %v4978_v0 = vpack.c.bf16 %v645_v59, %v644_v58  ;;  %v4981_v2 = vsel %vm1855_vm7, %v1865_v42, %v1869_v62 }
 0x11b   : > { %v4986_v7 = vsel %vm2744_vm8, %v2750_v43, %v2754_v3 }
 0x11c   : > { %v740_v4 = vshll.u32 %v4978_v0, 16  ;;  %v744_v5 = vshrl.u32 %v4978_v0, 16  ;;  %5833 = vst [vmem:[#allocation3_spill] sm:$0xff] %v4986_v7  ;;  %v5820_v27 = vrot.slane %v4978_v0, 1 }
 0x11d   : > { %v516_v6 = vpop.f32.mrb[24].mxu0 }
 0x11e   : > { %v4027_v8 = vpop.f32.mrb[25].mxu0  ;;  %v742_v10 = vrot.slane %v740_v4, 1  ;;  %v1871_v11 = vrot.slane %v744_v5, 1  ;;  %v1872_v12 = vrot.slane %v740_v4, 2  ;;  %v2756_v14 = vrot.slane %v744_v5, 2 }
 0x11f   : > { %v519_v13 = vpop.f32.mrb[26].mxu0  ;;  %v2757_v15 = vrot.slane %v740_v4, 3  ;;  %v646_v16 = vmax.f32 %v516_v6, 0.0  ;;  %v5030_v6 = vld [vmem:[%s5817_s2 + $0x14] sm:$0xf] }
 0x120   : > { %v647_v17 = vmax.f32 %v519_v13, 0.0  ;;  %v4028_v18 = vpop.f32.mrb[27].mxu0  ;;  %v743_v21 = vsel %vm699_vm5, %v738_v9, %v742_v10  ;;  %v1873_v22 = vor.u32 %v1872_v12, %v1871_v11  ;;  %v746_v37 = vor.u32 %v744_v5, %v742_v10 }
 0x121   : > { %4095 = vmatprep.mubr.msk.bf16.mxu0 %vm848_vm6, %v743_v21  ;;  %v2758_v23 = vor.u32 %v2757_v15, %v2756_v14 }
 0x122   : > { %v4990_v24 = vpack.c.bf16 %v647_v17, %v646_v16  ;;  %v4993_v25 = vsel %vm1855_vm7, %v1869_v62, %v1873_v22  ;;  %v1993_v62 = vsel %vm903_vm4, %v4932_v33, 0 }
 0x123   : > { %v4996_v26 = vsel %vm2744_vm8, %v2754_v3, %v2758_v23 }
 0x124   : > { %5834 = vst [vmem:[#allocation4_spill] sm:$0xff] %v4996_v26  ;;  %v1333_v28 = vrot.slane %v4990_v24, 1  ;;  %v748_v31 = vshll.u32 %v4990_v24, 16  ;;  %v752_v32 = vshrl.u32 %v4990_v24, 16 }
 0x125   : > { %v524_v34 = vpop.f32.mrb[28].mxu0 }
 0x126   : > { %v4031_v35 = vpop.f32.mrb[29].mxu0  ;;  %v5005_v36 = vsel %vm1321_vm9, %v5820_v27, %v1333_v28  ;;  %v750_v38 = vrot.slane %v748_v31, 1  ;;  %v1875_v39 = vrot.slane %v752_v32, 1  ;;  %v1876_v42 = vrot.slane %v748_v31, 2 }
 0x127   : > { %v527_v41 = vpop.f32.mrb[30].mxu0  ;;  %4209 = vmatprep.mubr.msk.bf16.mxu1 %vm848_vm6, %v5005_v36  ;;  %v2760_v43 = vrot.slane %v752_v32, 2  ;;  %v2761_v47 = vrot.slane %v748_v31, 3  ;;  %v648_v49 = vmax.f32 %v524_v34, 0.0 }
 0x128   : > { %v649_v50 = vmax.f32 %v527_v41, 0.0  ;;  %v4032_v51 = vpop.f32.mrb[31].mxu0  ;;  %v751_v52 = vsel %vm699_vm5, %v746_v37, %v750_v38  ;;  %v1877_v53 = vor.u32 %v1876_v42, %v1875_v39  ;;  %v754_v4 = vor.u32 %v752_v32, %v750_v38 }
 0x129   : > { %4096 = vmatmul.mubr.msk.bf16.gmra.mrb[92].mxu0 %vm848_vm6, %v751_v52  ;;  %v2762_v54 = vor.u32 %v2761_v47, %v2760_v43 }
 0x12a   : > { %v5011_v55 = vpack.c.bf16 %v649_v50, %v648_v49  ;;  %v5014_v56 = vsel %vm1855_vm7, %v1873_v22, %v1877_v53 }
 0x12b   : > { %v5017_v57 = vsel %vm2744_vm8, %v2758_v23, %v2762_v54 }
 0x12c   : > { %5835 = vst [vmem:[#allocation5_spill] sm:$0xff] %v5017_v57  ;;  %v1335_v58 = vrot.slane %v5011_v55, 1  ;;  %v756_v59 = vshll.u32 %v5011_v55, 16  ;;  %v760_v60 = vshrl.u32 %v5011_v55, 16 }
 0x12d   : > { %v532_v61 = vpop.f32.mrb[32].mxu0 }
 0x12e   : > { %v4035_v63 = vpop.f32.mrb[33].mxu0  ;;  %v5025_v3 = vsel %vm1321_vm9, %v1333_v28, %v1335_v58  ;;  %v758_v5 = vrot.slane %v756_v59, 1  ;;  %v1879_v8 = vrot.slane %v760_v60, 1  ;;  %v1880_v10 = vrot.slane %v756_v59, 2 }
 0x12f   : > { %v535_v9 = vpop.f32.mrb[34].mxu0  ;;  %4210 = vmatmul.mubr.msk.bf16.vlgmr.msra.gmra.mrb[0].mxu1 %vm848_vm6, %v5025_v3  ;;  %v2764_v11 = vrot.slane %v760_v60, 2  ;;  %v2765_v12 = vrot.slane %v756_v59, 3  ;;  %v650_v33 = vmax.f32 %v532_v61, 0.0 }
 0x130   : > { %v651_v13 = vmax.f32 %v535_v9, 0.0  ;;  %v4036_v14 = vpop.f32.mrb[35].mxu0  ;;  %v759_v15 = vsel %vm699_vm5, %v754_v4, %v758_v5  ;;  %4238 = vmatpush3.bf16.msra.mxu1 %v1993_v62  ;;  %v1881_v16 = vor.u32 %v1880_v10, %v1879_v8  ;;  %v762_v37 = vor.u32 %v760_v60, %v758_v5 }
 0x131   : > { %4099 = vmatprep.mubr.msk.bf16.mxu0 %vm848_vm6, %v759_v15  ;;  %4723 = vmatprep.subr.msk.bf16.mxu1 %vm903_vm4, %v5030_v6  ;;  %v2766_v17 = vor.u32 %v2765_v12, %v2764_v11 }
 0x132   : > { %v5038_v18 = vpack.c.bf16 %v651_v13, %v650_v33  ;;  %v5041_v21 = vsel %vm1855_vm7, %v1877_v53, %v1881_v16 }
 0x133   : > { %v5044_v22 = vsel %vm2744_vm8, %v2762_v54, %v2766_v17 }
 0x134   : > { %5836 = vst [vmem:[#allocation6_spill] sm:$0xff] %v5044_v22  ;;  %v1337_v23 = vrot.slane %v5038_v18, 1  ;;  %v764_v28 = vshll.u32 %v5038_v18, 16  ;;  %v768_v31 = vshrl.u32 %v5038_v18, 16 }
 0x135   : > { %v540_v32 = vpop.f32.mrb[36].mxu0 }
 0x136   : > { %v4039_v34 = vpop.f32.mrb[37].mxu0  ;;  %v5050_v35 = vsel %vm1321_vm9, %v1335_v58, %v1337_v23  ;;  %v766_v38 = vrot.slane %v764_v28, 1  ;;  %v1883_v39 = vrot.slane %v768_v31, 1  ;;  %v1884_v42 = vrot.slane %v764_v28, 2 }
 0x137   : > { %5837 = vst [vmem:[#allocation7_spill] sm:$0xff] %v5050_v35  ;;  %v543_v41 = vpop.f32.mrb[38].mxu0  ;;  %4213 = vmatprep.mubr.msk.bf16.mxu1 %vm848_vm6, %v5050_v35  ;;  %v2768_v43 = vrot.slane %v768_v31, 2  ;;  %v2769_v47 = vrot.slane %v764_v28, 3  ;;  %v652_v49 = vmax.f32 %v540_v32, 0.0 }
 0x138   : > { %v653_v50 = vmax.f32 %v543_v41, 0.0  ;;  %v4040_v51 = vpop.f32.mrb[39].mxu0  ;;  %v767_v52 = vsel %vm699_vm5, %v762_v37, %v766_v38  ;;  %v1885_v53 = vor.u32 %v1884_v42, %v1883_v39  ;;  %v770_v9 = vor.u32 %v768_v31, %v766_v38 }
 0x139   : > { %4100 = vmatmul.mubr.msk.bf16.gmra.mrb[96].mxu0 %vm848_vm6, %v767_v52  ;;  %v2770_v54 = vor.u32 %v2769_v47, %v2768_v43 }
 0x13a   : > { %v5056_v58 = vpack.c.bf16 %v653_v50, %v652_v49  ;;  %v5059_v59 = vsel %vm1855_vm7, %v1881_v16, %v1885_v53 }
 0x13b   : > { %v5062_v60 = vsel %vm2744_vm8, %v2766_v17, %v2770_v54 }
 0x13c   : > { %5838 = vst [vmem:[#allocation8_spill] sm:$0xff] %v5062_v60  ;;  %v1339_v61 = vrot.slane %v5056_v58, 1  ;;  %v772_v62 = vshll.u32 %v5056_v58, 16  ;;  %v776_v63 = vshrl.u32 %v5056_v58, 16 }
 0x13d   : > { %v548_v4 = vpop.f32.mrb[40].mxu0 }
 0x13e   : > { %v4043_v5 = vpop.f32.mrb[41].mxu0  ;;  %v5068_v8 = vsel %vm1321_vm9, %v1337_v23, %v1339_v61  ;;  %v774_v10 = vrot.slane %v772_v62, 1  ;;  %v1887_v11 = vrot.slane %v776_v63, 1  ;;  %v1888_v33 = vrot.slane %v772_v62, 2 }
 0x13f   : > { %5839 = vst [vmem:[#allocation9_spill] sm:$0xff] %v5068_v8  ;;  %v551_v12 = vpop.f32.mrb[42].mxu0  ;;  %4214 = vmatmul.mubr.msk.bf16.gmra.mrb[4].mxu1 %vm848_vm6, %v5068_v8  ;;  %v2772_v13 = vrot.slane %v776_v63, 2  ;;  %v2773_v14 = vrot.slane %v772_v62, 3  ;;  %v654_v15 = vmax.f32 %v548_v4, 0.0 }
 0x140   : > { %v655_v16 = vmax.f32 %v551_v12, 0.0  ;;  %v4044_v17 = vpop.f32.mrb[43].mxu0  ;;  %v775_v28 = vsel %vm699_vm5, %v770_v9, %v774_v10  ;;  %v1889_v32 = vor.u32 %v1888_v33, %v1887_v11  ;;  %v778_v49 = vor.u32 %v776_v63, %v774_v10 }
 0x141   : > { %4103 = vmatprep.mubr.msk.bf16.mxu0 %vm848_vm6, %v775_v28  ;;  %v2774_v23 = vor.u32 %v2773_v14, %v2772_v13 }
 0x142   : > { %v5074_v34 = vpack.c.bf16 %v655_v16, %v654_v15  ;;  %v5077_v31 = vsel %vm1855_vm7, %v1885_v53, %v1889_v32 }
 0x143   : > { %v5080_v37 = vsel %vm2744_vm8, %v2770_v54, %v2774_v23 }
 0x144   : > { %5840 = vst [vmem:[#allocation10_spill] sm:$0xff] %v5080_v37  ;;  %v1341_v38 = vrot.slane %v5074_v34, 1  ;;  %v780_v39 = vshll.u32 %v5074_v34, 16  ;;  %v784_v41 = vshrl.u32 %v5074_v34, 16 }
 0x145   : > { %v556_v42 = vpop.f32.mrb[44].mxu0 }
 0x146   : > { %v4047_v43 = vpop.f32.mrb[45].mxu0  ;;  %v5086_v47 = vsel %vm1321_vm9, %v1339_v61, %v1341_v38  ;;  %v782_v50 = vrot.slane %v780_v39, 1  ;;  %v1891_v51 = vrot.slane %v784_v41, 1  ;;  %v1892_v53 = vrot.slane %v780_v39, 2 }
 0x147   : > { %5841 = vst [vmem:[#allocation11_spill] sm:$0xff] %v5086_v47  ;;  %v559_v52 = vpop.f32.mrb[46].mxu0  ;;  %4217 = vmatprep.mubr.msk.bf16.mxu1 %vm848_vm6, %v5086_v47  ;;  %v2776_v54 = vrot.slane %v784_v41, 2  ;;  %v2777_v62 = vrot.slane %v780_v39, 3  ;;  %v656_v4 = vmax.f32 %v556_v42, 0.0 }
 0x148   : > { %v657_v5 = vmax.f32 %v559_v52, 0.0  ;;  %v4048_v9 = vpop.f32.mrb[47].mxu0  ;;  %v783_v11 = vsel %vm699_vm5, %v778_v49, %v782_v50  ;;  %v1893_v12 = vor.u32 %v1892_v53, %v1891_v51  ;;  %v786_v39 = vor.u32 %v784_v41, %v782_v50  ;;  %v5115_v41 = vld [vmem:[%s5817_s2 + $0x8] sm:$0xf] }
 0x149   : > { %4104 = vmatmul.mubr.msk.bf16.gmra.mrb[100].mxu0 %vm848_vm6, %v783_v11  ;;  %v2778_v61 = vor.u32 %v2777_v62, %v2776_v54  ;;  %4719 = vmatprep.subr.msk.bf16.mxu0 %vm903_vm4, %v5115_v41 }
 0x14a   : > { %v5092_v33 = vpack.c.bf16 %v657_v5, %v656_v4  ;;  %v5095_v63 = vsel %vm1855_vm7, %v1889_v32, %v1893_v12 }
 0x14b   : > { %v5098_v10 = vsel %vm2744_vm8, %v2774_v23, %v2778_v61 }
 0x14c   : > { %5842 = vst [vmem:[#allocation12_spill] sm:$0xff] %v5098_v10  ;;  %v1343_v13 = vrot.slane %v5092_v33, 1  ;;  %v788_v14 = vshll.u32 %v5092_v33, 16  ;;  %v792_v15 = vshrl.u32 %v5092_v33, 16 }
 0x14d   : > { %v564_v16 = vpop.f32.mrb[48].mxu0 }
 0x14e   : > { %v4051_v17 = vpop.f32.mrb[49].mxu0  ;;  %v5104_v28 = vsel %vm1321_vm9, %v1341_v38, %v1343_v13  ;;  %v790_v42 = vrot.slane %v788_v14, 1  ;;  %v1895_v43 = vrot.slane %v792_v15, 1  ;;  %v1896_v32 = vrot.slane %v788_v14, 2 }
 0x14f   : > { %5843 = vst [vmem:[#allocation13_spill] sm:$0xff] %v5104_v28  ;;  %v567_v49 = vpop.f32.mrb[50].mxu0  ;;  %4218 = vmatmul.mubr.msk.bf16.gmra.mrb[8].mxu1 %vm848_vm6, %v5104_v28  ;;  %v2780_v23 = vrot.slane %v792_v15, 2  ;;  %v2781_v51 = vrot.slane %v788_v14, 3  ;;  %v658_v52 = vmax.f32 %v564_v16, 0.0 }
 0x150   : > { %v659_v53 = vmax.f32 %v567_v49, 0.0  ;;  %v4052_v54 = vpop.f32.mrb[51].mxu0  ;;  %v791_v62 = vsel %vm699_vm5, %v786_v39, %v790_v42  ;;  %v1897_v4 = vor.u32 %v1896_v32, %v1895_v43  ;;  %v794_v49 = vor.u32 %v792_v15, %v790_v42 }
 0x151   : > { %4107 = vmatprep.mubr.msk.bf16.mxu0 %vm848_vm6, %v791_v62  ;;  %v2782_v38 = vor.u32 %v2781_v51, %v2780_v23 }
 0x152   : > { %v5110_v5 = vpack.c.bf16 %v659_v53, %v658_v52  ;;  %v5118_v50 = vsel %vm1855_vm7, %v1893_v12, %v1897_v4 }
 0x153   : > { %v5123_v9 = vsel %vm2744_vm8, %v2778_v61, %v2782_v38 }
 0x154   : > { %5844 = vst [vmem:[#allocation14_spill] sm:$0xff] %v5123_v9  ;;  %v1345_v11 = vrot.slane %v5110_v5, 1  ;;  %v796_v14 = vshll.u32 %v5110_v5, 16  ;;  %v800_v16 = vshrl.u32 %v5110_v5, 16 }
 0x155   : > { %v572_v17 = vpop.f32.mrb[52].mxu0 }
 0x156   : > { %v4055_v39 = vpop.f32.mrb[53].mxu0  ;;  %v5129_v43 = vsel %vm1321_vm9, %v1343_v13, %v1345_v11  ;;  %v798_v12 = vrot.slane %v796_v14, 1  ;;  %v1899_v32 = vrot.slane %v800_v16, 1  ;;  %v1900_v61 = vrot.slane %v796_v14, 2 }
 0x157   : > { %5845 = vst [vmem:[#allocation15_spill] sm:$0xff] %v5129_v43  ;;  %v575_v23 = vpop.f32.mrb[54].mxu0  ;;  %4221 = vmatprep.mubr.msk.bf16.mxu1 %vm848_vm6, %v5129_v43  ;;  %v2784_v51 = vrot.slane %v800_v16, 2  ;;  %v2785_v52 = vrot.slane %v796_v14, 3  ;;  %v660_v53 = vmax.f32 %v572_v17, 0.0 }
 0x158   : > { %v661_v54 = vmax.f32 %v575_v23, 0.0  ;;  %v4056_v62 = vpop.f32.mrb[55].mxu0  ;;  %v799_v27 = vsel %vm699_vm5, %v794_v49, %v798_v12  ;;  %v1901_v39 = vor.u32 %v1900_v61, %v1899_v32  ;;  %v802_v32 = vor.u32 %v800_v16, %v798_v12 }
 0x159   : > { %4108 = vmatmul.mubr.msk.bf16.gmra.mrb[104].mxu0 %vm848_vm6, %v799_v27  ;;  %v2786_v13 = vor.u32 %v2785_v52, %v2784_v51 }
 0x15a   : > { %v5135_v9 = vpack.c.bf16 %v661_v54, %v660_v53  ;;  %v5138_v15 = vsel %vm1855_vm7, %v1897_v4, %v1901_v39 }
 0x15b   : > { %v5141_v42 = vsel %vm2744_vm8, %v2782_v38, %v2786_v13 }
 0x15c   : > { %5846 = vst [vmem:[#allocation16_spill] sm:$0xff] %v5141_v42  ;;  %v1347_v10 = vrot.slane %v5135_v9, 1  ;;  %v804_v14 = vshll.u32 %v5135_v9, 16  ;;  %v808_v17 = vshrl.u32 %v5135_v9, 16 }
 0x15d   : > { %v580_v23 = vpop.f32.mrb[56].mxu0 }
 0x15e   : > { %v4059_v49 = vpop.f32.mrb[57].mxu0  ;;  %v5147_v27 = vsel %vm1321_vm9, %v1345_v11, %v1347_v10  ;;  %v806_v61 = vrot.slane %v804_v14, 1  ;;  %v1903_v51 = vrot.slane %v808_v17, 1  ;;  %v1904_v4 = vrot.slane %v804_v14, 2 }
 0x15f   : > { %5847 = vst [vmem:[#allocation17_spill] sm:$0xff] %v5147_v27  ;;  %v583_v52 = vpop.f32.mrb[58].mxu0  ;;  %4222 = vmatmul.mubr.msk.bf16.gmra.mrb[12].mxu1 %vm848_vm6, %v5147_v27  ;;  %v2788_v38 = vrot.slane %v808_v17, 2  ;;  %v662_v53 = vmax.f32 %v580_v23, 0.0  ;;  %v2789_v37 = vrot.slane %v804_v14, 3 }
 0x160   : > { %v663_v54 = vmax.f32 %v583_v52, 0.0  ;;  %v4060_v62 = vpop.f32.mrb[59].mxu0  ;;  %v807_v42 = vsel %vm699_vm5, %v802_v32, %v806_v61  ;;  %v1905_v49 = vor.u32 %v1904_v4, %v1903_v51  ;;  %v810_v32 = vor.u32 %v808_v17, %v806_v61 }
 0x161   : > { %4111 = vmatprep.mubr.msk.bf16.mxu0 %vm848_vm6, %v807_v42  ;;  %v2790_v16 = vor.u32 %v2789_v37, %v2788_v38 }
 0x162   : > { %v5153_v11 = vpack.c.bf16 %v663_v54, %v662_v53  ;;  %v5156_v12 = vsel %vm1855_vm7, %v1901_v39, %v1905_v49 }
 0x163   : > { %v5162_v62 = vsel %vm2744_vm8, %v2786_v13, %v2790_v16 }
 0x164   : > { %v1349_v60 = vrot.slane %v5153_v11, 1  ;;  %v812_v22 = vshll.u32 %v5153_v11, 16  ;;  %v816_v23 = vshrl.u32 %v5153_v11, 16  ;;  %5848 = vst [vmem:[#allocation18_spill] sm:$0xff] %v5162_v62 }
 0x165   : > { %v588_v52 = vpop.f32.mrb[60].mxu0 }
 0x166   : > { %v4063_v14 = vpop.f32.mrb[61].mxu0  ;;  %v5165_v42 = vsel %vm1321_vm9, %v1347_v10, %v1349_v60  ;;  %v814_v51 = vrot.slane %v812_v22, 1  ;;  %v1907_v37 = vrot.slane %v816_v23, 1  ;;  %v1908_v39 = vrot.slane %v812_v22, 2 }
 0x167   : > { %5849 = vst [vmem:[#allocation19_spill] sm:$0xff] %v5165_v42  ;;  %v591_v4 = vpop.f32.mrb[62].mxu0  ;;  %4225 = vmatprep.mubr.msk.bf16.mxu1 %vm848_vm6, %v5165_v42  ;;  %v2792_v38 = vrot.slane %v816_v23, 2  ;;  %v2793_v53 = vrot.slane %v812_v22, 3  ;;  %v664_v54 = vmax.f32 %v588_v52, 0.0 }
 0x168   : > { %v665_v57 = vmax.f32 %v591_v4, 0.0  ;;  %v4064_v26 = vpop.f32.mrb[63].mxu0  ;;  %v815_v13 = vsel %vm699_vm5, %v810_v32, %v814_v51  ;;  %v1909_v14 = vor.u32 %v1908_v39, %v1907_v37  ;;  %v818_v37 = vor.u32 %v816_v23, %v814_v51 }
 0x169   : > { %4112 = vmatmul.mubr.msk.bf16.gmra.mrb[108].mxu0 %vm848_vm6, %v815_v13  ;;  %v2794_v10 = vor.u32 %v2793_v53, %v2792_v38 }
 0x16a   : > { %v5171_v62 = vpack.c.bf16 %v665_v57, %v664_v54  ;;  %v5174_v17 = vsel %vm1855_vm7, %v1905_v49, %v1909_v14 }
 0x16b   : > { %v5177_v61 = vsel %vm2744_vm8, %v2790_v16, %v2794_v10 }
 0x16c   : > { %5850 = vst [vmem:[#allocation20_spill] sm:$0xff] %v5177_v61  ;;  %v1351_v7 = vrot.slane %v5171_v62, 1  ;;  %v820_v22 = vshll.u32 %v5171_v62, 16  ;;  %v824_v26 = vshrl.u32 %v5171_v62, 16 }
 0x16d   : > { %v596_v52 = vpop.f32.mrb[64].mxu0 }
 0x16e   : > { %v4067_v32 = vpop.f32.mrb[65].mxu0  ;;  %v5183_v4 = vsel %vm1321_vm9, %v1349_v60, %v1351_v7  ;;  %v822_v57 = vrot.slane %v820_v22, 1  ;;  %v1911_v39 = vrot.slane %v824_v26, 1  ;;  %v1912_v49 = vrot.slane %v820_v22, 2 }
 0x16f   : > { %5851 = vst [vmem:[#allocation21_spill] sm:$0xff] %v5183_v4  ;;  %v599_v38 = vpop.f32.mrb[66].mxu0  ;;  %4226 = vmatmul.mubr.msk.bf16.gmra.mrb[16].mxu1 %vm848_vm6, %v5183_v4  ;;  %v2796_v16 = vrot.slane %v824_v26, 2  ;;  %v2797_v53 = vrot.slane %v820_v22, 3  ;;  %v666_v54 = vmax.f32 %v596_v52, 0.0 }
 0x170   : > { %v667_v13 = vmax.f32 %v599_v38, 0.0  ;;  %v4068_v61 = vpop.f32.mrb[67].mxu0  ;;  %v823_v46 = vsel %vm699_vm5, %v818_v37, %v822_v57  ;;  %v1913_v32 = vor.u32 %v1912_v49, %v1911_v39  ;;  %v826_v39 = vor.u32 %v824_v26, %v822_v57 }
 0x171   : > { %4115 = vmatprep.mubr.msk.bf16.mxu0 %vm848_vm6, %v823_v46  ;;  %v2798_v60 = vor.u32 %v2797_v53, %v2796_v16 }
 0x172   : > { %v5189_v42 = vpack.c.bf16 %v667_v13, %v666_v54  ;;  %v5192_v23 = vsel %vm1855_vm7, %v1909_v14, %v1913_v32 }
 0x173   : > { %v5195_v51 = vsel %vm2744_vm8, %v2794_v10, %v2798_v60 }
 0x174   : > { %5852 = vst [vmem:[#allocation22_spill] sm:$0xff] %v5195_v51  ;;  %v1353_v4 = vrot.slane %v5189_v42, 1  ;;  %v828_v22 = vshll.u32 %v5189_v42, 16  ;;  %v832_v61 = vshrl.u32 %v5189_v42, 16 }
 0x175   : > { %v604_v52 = vpop.f32.mrb[68].mxu0 }
 0x176   : > { %v4071_v37 = vpop.f32.mrb[69].mxu0  ;;  %v5201_v46 = vsel %vm1321_vm9, %v1351_v7, %v1353_v4  ;;  %v830_v38 = vrot.slane %v828_v22, 1  ;;  %v1915_v49 = vrot.slane %v832_v61, 1  ;;  %v1916_v14 = vrot.slane %v828_v22, 2 }
 0x177   : > { %5853 = vst [vmem:[#allocation23_spill] sm:$0xff] %v5201_v46  ;;  %v607_v16 = vpop.f32.mrb[70].mxu0  ;;  %4229 = vmatprep.mubr.msk.bf16.mxu1 %vm848_vm6, %v5201_v46  ;;  %v2800_v10 = vrot.slane %v832_v61, 2  ;;  %v2801_v53 = vrot.slane %v828_v22, 3  ;;  %v668_v54 = vmax.f32 %v604_v52, 0.0 }
 0x178   : > { %v669_v13 = vmax.f32 %v607_v16, 0.0  ;;  %v4072_v51 = vpop.f32.mrb[71].mxu0  ;;  %v831_v27 = vsel %vm699_vm5, %v826_v39, %v830_v38  ;;  %v1917_v37 = vor.u32 %v1916_v14, %v1915_v49  ;;  %v834_v49 = vor.u32 %v832_v61, %v830_v38 }
 0x179   : > { %4116 = vmatmul.mubr.msk.bf16.gmra.mrb[112].mxu0 %vm848_vm6, %v831_v27  ;;  %v2802_v7 = vor.u32 %v2801_v53, %v2800_v10 }
 0x17a   : > { %v5207_v43 = vpack.c.bf16 %v669_v13, %v668_v54  ;;  %v5210_v26 = vsel %vm1855_vm7, %v1913_v32, %v1917_v37 }
 0x17b   : > { %v5213_v57 = vsel %vm2744_vm8, %v2798_v60, %v2802_v7 }
 0x17c   : > { %5854 = vst [vmem:[#allocation24_spill] sm:$0xff] %v5213_v57  ;;  %v1355_v46 = vrot.slane %v5207_v43, 1  ;;  %v836_v22 = vshll.u32 %v5207_v43, 16  ;;  %v840_v51 = vshrl.u32 %v5207_v43, 16 }
 0x17d   : > { %v612_v52 = vpop.f32.mrb[72].mxu0 }
 0x17e   : > { %v4075_v39 = vpop.f32.mrb[73].mxu0  ;;  %v5219_v27 = vsel %vm1321_vm9, %v1353_v4, %v1355_v46  ;;  %v838_v16 = vrot.slane %v836_v22, 1  ;;  %v1919_v14 = vrot.slane %v840_v51, 1  ;;  %v1920_v32 = vrot.slane %v836_v22, 2 }
 0x17f   : > { %5855 = vst [vmem:[#allocation25_spill] sm:$0xff] %v5219_v27  ;;  %v615_v10 = vpop.f32.mrb[74].mxu0  ;;  %4230 = vmatmul.mubr.msk.bf16.gmra.mrb[20].mxu1 %vm848_vm6, %v5219_v27  ;;  %v2804_v60 = vrot.slane %v840_v51, 2  ;;  %v2805_v53 = vrot.slane %v836_v22, 3  ;;  %v670_v54 = vmax.f32 %v612_v52, 0.0 }
 0x180   : > { %v671_v13 = vmax.f32 %v615_v10, 0.0  ;;  %v4076_v57 = vpop.f32.mrb[75].mxu0  ;;  %v839_v28 = vsel %vm699_vm5, %v834_v49, %v838_v16  ;;  %v1921_v39 = vor.u32 %v1920_v32, %v1919_v14  ;;  %v842_v14 = vor.u32 %v840_v51, %v838_v16 }
 0x181   : > { %4119 = vmatprep.mubr.msk.bf16.mxu0 %vm848_vm6, %v839_v28  ;;  %v2806_v4 = vor.u32 %v2805_v53, %v2804_v60 }
 0x182   : > { %v5225_v47 = vpack.c.bf16 %v671_v13, %v670_v54  ;;  %v5228_v61 = vsel %vm1855_vm7, %v1917_v37, %v1921_v39 }
 0x183   : > { %v5231_v38 = vsel %vm2744_vm8, %v2802_v7, %v2806_v4 }
 0x184   : > { %5856 = vst [vmem:[#allocation26_spill] sm:$0xff] %v5231_v38  ;;  %v1357_v27 = vrot.slane %v5225_v47, 1  ;;  %v844_v22 = vshll.u32 %v5225_v47, 16  ;;  %v1923_v57 = vshrl.u32 %v5225_v47, 16 }
 0x185   : > { %v620_v52 = vpop.f32.mrb[76].mxu0 }
 0x186   : > { %v4079_v49 = vpop.f32.mrb[77].mxu0  ;;  %v5237_v28 = vsel %vm1321_vm9, %v1355_v46, %v1357_v27  ;;  %v846_v10 = vrot.slane %v844_v22, 1  ;;  %v1925_v32 = vrot.slane %v1923_v57, 1  ;;  %v1926_v37 = vrot.slane %v844_v22, 2 }
 0x187   : > { %v623_v60 = vpop.f32.mrb[78].mxu0  ;;  %4233 = vmatprep.mubr.msk.bf16.mxu1 %vm848_vm6, %v5237_v28  ;;  %v2808_v7 = vrot.slane %v1923_v57, 2  ;;  %v2809_v53 = vrot.slane %v844_v22, 3  ;;  %v672_v54 = vmax.f32 %v620_v52, 0.0 }
 0x188   : > { %v673_v13 = vmax.f32 %v623_v60, 0.0  ;;  %v4080_v38 = vpop.f32.mrb[79].mxu0  ;;  %v847_v8 = vsel %vm699_vm5, %v842_v14, %v846_v10  ;;  %v1927_v49 = vor.u32 %v1926_v37, %v1925_v32  ;;  %v5831_v10 = vrot.slane %v5225_v47, 2 }
 0x189   : > { %4120 = vmatmul.mubr.msk.bf16.gmra.mrb[116].mxu0 %vm848_vm6, %v847_v8  ;;  %v2810_v46 = vor.u32 %v2809_v53, %v2808_v7  ;;  %v1414_v8 = vsel %vm903_vm4, %v5115_v41, 0  ;;  %v3129_v32 = vrot.slane %v5225_v47, 3 }
 0x18a   : > { %v694_v35 = vpack.c.bf16 %v673_v13, %v672_v54  ;;  %4125 = vmatprep.mubr.msk.bf16.mxu0 %vm848_vm6, %v4936_v40  ;;  %v5246_v51 = vsel %vm1855_vm7, %v1921_v39, %v1927_v49 }
 0x18b   : > { %v5249_v16 = vsel %vm2744_vm8, %v2806_v4, %v2810_v46 }
 0x18c   : > { %5857 = vst [vmem:[#allocation27_spill] sm:$0xff] %v5249_v16  ;;  %v1632_v22 = vrot.slane %v694_v35, 1  ;;  %v1930_v38 = vshrl.u32 %v694_v35, 16  ;;  %v1933_v57 = vshll.u32 %v694_v35, 16  ;;  %v2246_v52 = vrot.slane %v694_v35, 2 }
 0x18d   : > { %v628_v14 = vpop.f32.mrb[80].mxu0  ;;  %v3131_v60 = vrot.slane %v694_v35, 3 }
 0x18e   : > { %v674_v39 = vmax.f32 %v628_v14, 0.0  ;;  %v1633_v37 = vsel %vm1321_vm9, %v1357_v27, %v1632_v22  ;;  %v1932_v7 = vrot.slane %v1930_v38, 1  ;;  %v1935_v4 = vrot.slane %v1933_v57, 2  ;;  %v4083_v53 = vpop.f32.mrb[81].mxu0 }
 0x18f   : > { %4234 = vmatmul.mubr.msk.bf16.gmra.mrb[24].mxu1 %vm848_vm6, %v1633_v37  ;;  %v5260_v54 = vsel %vm2210_vm10, %v5831_v10, %v2246_v52  ;;  %v631_v13 = vpop.f32.mrb[82].mxu0  ;;  %v2812_v41 = vrot.slane %v1930_v38, 2  ;;  %v2813_v16 = vrot.slane %v1933_v57, 3  ;;  %v5265_v35 = vsel %vm3097_vm11, %v3129_v32, %v3131_v60 }
 0x190   : > { %v695_v14 = vpack.c.bf16 %v674_v39, %v674_v39  ;;  %4239 = vmatprep.mubr.msk.bf16.mxu1 %vm848_vm6, %v4955_v20  ;;  %v1936_v27 = vor.u32 %v1935_v4, %v1932_v7  ;;  %v4084_v22 = vpop.f32.mrb[83].mxu0  ;;  %v2303_v13 = vsel %vm903_vm4, %v5030_v6, 0  ;;  %v1325_v6 = vrot.slane %v4946_v1, 1 }
 0x191   : > { %4126 = vmatmul.mubr.msk.bf16.vlgmr.msra.gmra.mrb[84].mxu0 %vm848_vm6, %v4939_v48  ;;  %v2814_v37 = vor.u32 %v2813_v16, %v2812_v41 }
 0x192   : > { %v2817_v53 = vshrl.u32 %v695_v14, 16  ;;  %v2820_v10 = vshll.u32 %v695_v14, 16  ;;  %4129 = vmatprep.mubr.msk.bf16.mxu0 %vm848_vm6, %v4946_v1  ;;  %4162 = vmatpush3.bf16.msra.mxu0 %v1414_v8  ;;  %v1937_v38 = vsel %vm1855_vm7, %v1927_v49, %v1936_v27  ;;  %v2521_v57 = vrot.slane %v695_v14, 2  ;;  %v3740_v49 = vld [vmem:[%s5817_s2 + $0x18] sm:$0xf] }
 0x193   : > { %4720 = vmatprep.subr.msk.bf16.mxu0 %vm903_vm4, %v4912_v29  ;;  %v5277_v20 = vsel %vm2744_vm8, %v2810_v46, %v2814_v37  ;;  %v3133_v39 = vrot.slane %v695_v14, 3  ;;  %v2222_v14 = vrot.slane %v5011_v55, 2  ;;  %v2224_v27 = vrot.slane %v5038_v18, 2 }
 0x194   : > { %v2819_v7 = vrot.slane %v2817_v53, 2  ;;  %v2822_v4 = vrot.slane %v2820_v10, 3  ;;  %v5280_v16 = vsel %vm2210_vm10, %v2246_v52, %v2521_v57  ;;  %v2218_v52 = vrot.slane %v4978_v0, 2  ;;  %v5859_v53 = vld [vmem:[#allocation7_spill] sm:$0xff] }
 0x195   : > { %v5285_v8 = vsel %vm3097_vm11, %v3131_v60, %v3133_v39  ;;  %v2220_v10 = vrot.slane %v4990_v24, 2 }
 0x196   : > { %v2823_v29 = vor.u32 %v2822_v4, %v2819_v7  ;;  %v5861_v7 = vld [vmem:[#allocation11_spill] sm:$0xff]  ;;  %v5862_v4 = vld [vmem:[#allocation13_spill] sm:$0xff] }
 0x197   : > { %4240 = vmatmul.mubr.msk.bf16.vlgmr.msra.gmra.mrb[28].mxu1 %vm848_vm6, %v4969_v45  ;;  %v1323_v45 = vrot.slane %v4939_v48, 1  ;;  %v2221_v41 = vsel %vm2210_vm10, %v2218_v52, %v2220_v10  ;;  %v2223_v22 = vsel %vm2210_vm10, %v2220_v10, %v2222_v14  ;;  %v5868_v10 = vld [vmem:[#allocation25_spill] sm:$0xff] }
 0x198   : > { %4276 = vmatpush3.bf16.msra.mxu1 %v2303_v13  ;;  %4243 = vmatprep.mubr.msk.bf16.mxu1 %vm848_vm6, %v4981_v2  ;;  %v5295_v46 = vsel %vm2744_vm8, %v2814_v37, %v2823_v29  ;;  %v1322_v2 = vrot.slane %v4936_v40, 1  ;;  %v2225_v37 = vsel %vm2210_vm10, %v2222_v14, %v2224_v27  ;;  %v2230_v13 = vrot.slane %v5092_v33, 2 }
 0x199   : > { %4130 = vmatmul.mubr.msk.bf16.gmra.mrb[88].mxu0 %vm848_vm6, %v4952_v19  ;;  %4724 = vmatprep.subr.msk.bf16.mxu1 %vm903_vm4, %v3740_v49  ;;  %v2242_v14 = vrot.slane %v5207_v43, 2 }
 0x19a   : > { %4133 = vmatprep.mubr.msk.bf16.mxu0 %vm848_vm6, %v4966_v44 }
 0x19f   : > { %4244 = vmatmul.mubr.msk.bf16.gmra.mrb[32].mxu1 %vm848_vm6, %v4993_v25  ;;  %v1324_v25 = vsel %vm1321_vm9, %v1322_v2, %v1323_v45  ;;  %v5863_v2 = vld [vmem:[#allocation15_spill] sm:$0xff] }
 0x1a0   : > { %4247 = vmatprep.mubr.msk.bf16.mxu1 %vm848_vm6, %v5014_v56  ;;  %v2212_v56 = vrot.slane %v4946_v1, 2 }
 0x1a1   : > { %4134 = vmatmul.mubr.msk.bf16.gmra.mrb[92].mxu0 %vm848_vm6, %v4978_v0 }
 0x1a2   : > { %4137 = vmatprep.mubr.msk.bf16.mxu0 %vm848_vm6, %v4990_v24 }
 0x1a7   : > { %4248 = vmatmul.mubr.msk.bf16.gmra.mrb[0].mxu1 %vm848_vm6, %v5041_v21  ;;  %v2211_v21 = vrot.slane %v4939_v48, 2  ;;  %v2214_v48 = vrot.slane %v4952_v19, 2 }
 0x1a8   : > { %4251 = vmatprep.mubr.msk.bf16.mxu1 %vm848_vm6, %v5059_v59  ;;  %v1327_v59 = vrot.slane %v4952_v19, 1 }
 0x1a9   : > { %4138 = vmatmul.mubr.msk.bf16.gmra.mrb[96].mxu0 %vm848_vm6, %v5011_v55  ;;  %v2213_v40 = vsel %vm2210_vm10, %v2211_v21, %v2212_v56 }
 0x1aa   : > { %4141 = vmatprep.mubr.msk.bf16.mxu0 %vm848_vm6, %v5038_v18 }
 0x1af   : > { %4252 = vmatmul.mubr.msk.bf16.gmra.mrb[4].mxu1 %vm848_vm6, %v5077_v31  ;;  %v5368_v31 = vsel %vm1321_vm9, %v1323_v45, %v1325_v6 }
 0x1b0   : > { %4255 = vmatprep.mubr.msk.bf16.mxu1 %vm848_vm6, %v5095_v63  ;;  %v5373_v63 = vsel %vm1321_vm9, %v1325_v6, %v1327_v59  ;;  %v2236_v6 = vrot.slane %v5153_v11, 2 }
 0x1b1   : > { %4142 = vmatmul.mubr.msk.bf16.gmra.mrb[100].mxu0 %vm848_vm6, %v5056_v58 }
 0x1b2   : > { %4145 = vmatprep.mubr.msk.bf16.mxu0 %vm848_vm6, %v5074_v34 }
 0x1b7   : > { %4256 = vmatmul.mubr.msk.bf16.gmra.mrb[8].mxu1 %vm848_vm6, %v5118_v50  ;;  %v2216_v50 = vrot.slane %v4966_v44, 2 }
 0x1b8   : > { %4259 = vmatprep.mubr.msk.bf16.mxu1 %vm848_vm6, %v5138_v15  ;;  %v1329_v15 = vrot.slane %v4966_v44, 1 }
 0x1b9   : > { %4146 = vmatmul.mubr.msk.bf16.gmra.mrb[104].mxu0 %vm848_vm6, %v5092_v33  ;;  %v2219_v60 = vsel %vm2210_vm10, %v2216_v50, %v2218_v52  ;;  %v5867_v52 = vld [vmem:[#allocation23_spill] sm:$0xff] }
 0x1ba   : > { %4149 = vmatprep.mubr.msk.bf16.mxu0 %vm848_vm6, %v5110_v5 }
 0x1bf   : > { %4260 = vmatmul.mubr.msk.bf16.gmra.mrb[12].mxu1 %vm848_vm6, %v5156_v12  ;;  %v2527_v12 = vsel %vm903_vm4, %v3740_v49, 0  ;;  %v2232_v49 = vrot.slane %v5110_v5, 2 }
 0x1c0   : > { %4263 = vmatprep.mubr.msk.bf16.mxu1 %vm848_vm6, %v5174_v17  ;;  %v5383_v17 = vsel %vm2210_vm10, %v2212_v56, %v2214_v48  ;;  %v2234_v56 = vrot.slane %v5135_v9, 2 }
 0x1c1   : > { %4150 = vmatmul.mubr.msk.bf16.gmra.mrb[108].mxu0 %vm848_vm6, %v5135_v9  ;;  %v2233_v45 = vsel %vm2210_vm10, %v2230_v13, %v2232_v49 }
 0x1c2   : > { %4153 = vmatprep.mubr.msk.bf16.mxu0 %vm848_vm6, %v5153_v11  ;;  %v2235_v21 = vsel %vm2210_vm10, %v2232_v49, %v2234_v56 }
 0x1c7   : > { %4264 = vmatmul.mubr.msk.bf16.gmra.mrb[16].mxu1 %vm848_vm6, %v5192_v23  ;;  %v5388_v23 = vld [vmem:[%s5817_s2 + $0x1c] sm:$0xf] }
 0x1c8   : > { %4267 = vmatprep.mubr.msk.bf16.mxu1 %vm848_vm6, %v5210_v26  ;;  %v5393_v26 = vsel %vm2210_vm10, %v2214_v48, %v2216_v50  ;;  %v5866_v48 = vld [vmem:[#allocation21_spill] sm:$0xff]  ;;  %v2238_v50 = vrot.slane %v5171_v62, 2 }
 0x1c9   : > { %4154 = vmatmul.mubr.msk.bf16.gmra.mrb[112].mxu0 %vm848_vm6, %v5171_v62 }
 0x1ca   : > { %4157 = vmatprep.mubr.msk.bf16.mxu0 %vm848_vm6, %v5189_v42 }
 0x1cf   : > { %4268 = vmatmul.mubr.msk.bf16.gmra.mrb[20].mxu1 %vm848_vm6, %v5228_v61  ;;  %v5858_v61 = vrot.slane %v4978_v0, 1 }
 0x1d0   : > { %4271 = vmatprep.mubr.msk.bf16.mxu1 %vm848_vm6, %v5246_v51 }
 0x1d1   : > { %4158 = vmatmul.mubr.msk.bf16.gmra.mrb[116].mxu0 %vm848_vm6, %v5207_v43  ;;  %v5405_v51 = vsel %vm1321_vm9, %v1329_v15, %v5858_v61 }
 0x1d2   : > { %4163 = vmatprep.mubr.msk.bf16.mxu0 %vm848_vm6, %v1324_v25  ;;  %v5864_v25 = vld [vmem:[#allocation17_spill] sm:$0xff] }
 0x1d7   : > { %4272 = vmatmul.mubr.msk.bf16.gmra.mrb[24].mxu1 %vm848_vm6, %v1937_v38  ;;  %v5860_v38 = vld [vmem:[#allocation9_spill] sm:$0xff] }
 0x1d8   : > { %4277 = vmatprep.mubr.msk.bf16.mxu1 %vm848_vm6, %v2213_v40  ;;  %v5865_v40 = vld [vmem:[#allocation19_spill] sm:$0xff] }
 0x1d9   : > { %4164 = vmatmul.mubr.msk.bf16.vlgmr.msra.gmra.mrb[84].mxu0 %vm848_vm6, %v5368_v31 }
 0x1da   : > { %4167 = vmatprep.mubr.msk.bf16.mxu0 %vm848_vm6, %v5373_v63  ;;  %4200 = vmatpush3.bf16.msra.mxu0 %v4920_v30  ;;  %v5398_v30 = vsel %vm1321_vm9, %v1327_v59, %v1329_v15  ;;  %v2237_v59 = vsel %vm2210_vm10, %v2234_v56, %v2236_v6  ;;  %v2240_v15 = vrot.slane %v5189_v42, 2 }
 0x1dc   : > { %v2241_v61 = vsel %vm2210_vm10, %v2238_v50, %v2240_v15 }
 0x1df   : > { %4278 = vmatmul.mubr.msk.bf16.vlgmr.msra.gmra.mrb[28].mxu1 %vm848_vm6, %v5383_v17 }
 0x1e0   : > { %4314 = vmatpush3.bf16.msra.mxu1 %v2527_v12  ;;  %4281 = vmatprep.mubr.msk.bf16.mxu1 %vm848_vm6, %v5393_v26  ;;  %v2239_v12 = vsel %vm2210_vm10, %v2236_v6, %v2238_v50 }
 0x1e1   : > { %4168 = vmatmul.mubr.msk.bf16.gmra.mrb[88].mxu0 %vm848_vm6, %v5398_v30  ;;  %4725 = vmatprep.subr.msk.bf16.mxu1 %vm903_vm4, %v5388_v23 }
 0x1e2   : > { %4171 = vmatprep.mubr.msk.bf16.mxu0 %vm848_vm6, %v5405_v51 }
 0x1e7   : > { %4282 = vmatmul.mubr.msk.bf16.gmra.mrb[32].mxu1 %vm848_vm6, %v2219_v60 }
 0x1e8   : > { %4285 = vmatprep.mubr.msk.bf16.mxu1 %vm848_vm6, %v2221_v41 }
 0x1e9   : > { %4172 = vmatmul.mubr.msk.bf16.gmra.mrb[92].mxu0 %vm848_vm6, %v5005_v36  ;;  %v2226_v36 = vrot.slane %v5056_v58, 2 }
 0x1ea   : > { %4175 = vmatprep.mubr.msk.bf16.mxu0 %vm848_vm6, %v5025_v3  ;;  %v2228_v3 = vrot.slane %v5074_v34, 2 }
 0x1eb   : > { %v2227_v57 = vsel %vm2210_vm10, %v2224_v27, %v2226_v36  ;;  %v2243_v27 = vsel %vm2210_vm10, %v2240_v15, %v2242_v14 }
 0x1ec   : > { %v2229_v39 = vsel %vm2210_vm10, %v2226_v36, %v2228_v3  ;;  %v2231_v29 = vsel %vm2210_vm10, %v2228_v3, %v2230_v13  ;;  %v2880_v36 = vsel %vm903_vm4, %v5388_v23, 0  ;;  %v5872_v23 = vld [vmem:[#allocation4_spill] sm:$0xff]  ;;  %v5882_v3 = vld [vmem:[#allocation22_spill] sm:$0xff]  ;;  %v3098_v13 = vrot.slane %v4946_v1, 3 }
 0x1ed   : > { %v3105_v1 = vrot.slane %v4990_v24, 3  ;;  %v3109_v24 = vrot.slane %v5038_v18, 3  ;;  %v3113_v18 = vrot.slane %v5074_v34, 3  ;;  %v3117_v34 = vrot.slane %v5110_v5, 3 }
 0x1ee   : > { %v3121_v5 = vrot.slane %v5153_v11, 3  ;;  %v3125_v11 = vrot.slane %v5189_v42, 3 }
 0x1ef   : > { %4286 = vmatmul.mubr.msk.bf16.gmra.mrb[0].mxu1 %vm848_vm6, %v2223_v22 }
 0x1f0   : > { %4289 = vmatprep.mubr.msk.bf16.mxu1 %vm848_vm6, %v2225_v37 }
 0x1f1   : > { %4176 = vmatmul.mubr.msk.bf16.gmra.mrb[96].mxu0 %vm848_vm6, %v5859_v53  ;;  %v5869_v53 = vrot.slane %v5225_v47, 2 }
 0x1f2   : > { %4179 = vmatprep.mubr.msk.bf16.mxu0 %vm848_vm6, %v5860_v38 }
 0x1f3   : > { %v2245_v38 = vsel %vm2210_vm10, %v2242_v14, %v5869_v53 }
 0x1f7   : > { %4290 = vmatmul.mubr.msk.bf16.gmra.mrb[4].mxu1 %vm848_vm6, %v2227_v57 }
 0x1f8   : > { %4293 = vmatprep.mubr.msk.bf16.mxu1 %vm848_vm6, %v2229_v39 }
 0x1f9   : > { %4180 = vmatmul.mubr.msk.bf16.gmra.mrb[100].mxu0 %vm848_vm6, %v5861_v7  ;;  %v5885_v7 = vld [vmem:[#allocation27_spill] sm:$0xff] }
 0x1fa   : > { %4183 = vmatprep.mubr.msk.bf16.mxu0 %vm848_vm6, %v5862_v4  ;;  %v3099_v4 = vrot.slane %v4952_v19, 3  ;;  %v3107_v19 = vrot.slane %v5011_v55, 3  ;;  %v3111_v55 = vrot.slane %v5056_v58, 3  ;;  %v3115_v58 = vrot.slane %v5092_v33, 3 }
 0x1fb   : > { %v3119_v33 = vrot.slane %v5135_v9, 3  ;;  %v3123_v9 = vrot.slane %v5171_v62, 3  ;;  %v3127_v62 = vrot.slane %v5207_v43, 3 }
 0x1fc   : > { %v3100_v49 = vsel %vm3097_vm11, %v3098_v13, %v3099_v4  ;;  %v3108_v6 = vsel %vm3097_vm11, %v3105_v1, %v3107_v19  ;;  %v3112_v15 = vsel %vm3097_vm11, %v3109_v24, %v3111_v55 }
 0x1ff   : > { %4294 = vmatmul.mubr.msk.bf16.gmra.mrb[8].mxu1 %vm848_vm6, %v2231_v29 }
 0x200   : > { %4297 = vmatprep.mubr.msk.bf16.mxu1 %vm848_vm6, %v2233_v45 }
 0x201   : > { %4184 = vmatmul.mubr.msk.bf16.gmra.mrb[104].mxu0 %vm848_vm6, %v5863_v2 }
 0x202   : > { %4187 = vmatprep.mubr.msk.bf16.mxu0 %vm848_vm6, %v5864_v25 }
 0x207   : > { %4298 = vmatmul.mubr.msk.bf16.gmra.mrb[12].mxu1 %vm848_vm6, %v2235_v21 }
 0x208   : > { %4301 = vmatprep.mubr.msk.bf16.mxu1 %vm848_vm6, %v2237_v59 }
 0x209   : > { %4188 = vmatmul.mubr.msk.bf16.gmra.mrb[108].mxu0 %vm848_vm6, %v5865_v40 }
 0x20a   : > { %4191 = vmatprep.mubr.msk.bf16.mxu0 %vm848_vm6, %v5866_v48  ;;  %v3110_v48 = vsel %vm3097_vm11, %v3107_v19, %v3109_v24 }
 0x20f   : > { %4302 = vmatmul.mubr.msk.bf16.gmra.mrb[16].mxu1 %vm848_vm6, %v2239_v12 }
 0x210   : > { %4305 = vmatprep.mubr.msk.bf16.mxu1 %vm848_vm6, %v2241_v61 }
 0x211   : > { %4192 = vmatmul.mubr.msk.bf16.gmra.mrb[112].mxu0 %vm848_vm6, %v5867_v52 }
 0x212   : > { %4195 = vmatprep.mubr.msk.bf16.mxu0 %vm848_vm6, %v5868_v10  ;;  %v3114_v10 = vsel %vm3097_vm11, %v3111_v55, %v3113_v18 }
 0x217   : > { %4306 = vmatmul.mubr.msk.bf16.gmra.mrb[20].mxu1 %vm848_vm6, %v2243_v27 }
 0x218   : > { %4309 = vmatprep.mubr.msk.bf16.mxu1 %vm848_vm6, %v2245_v38 }
 0x219   : > { %4196 = vmatmul.mubr.msk.bf16.gmra.mrb[116].mxu0 %vm848_vm6, %v5237_v28  ;;  %v3778_v28 = vld [vmem:[%s5817_s2 + $0x20] sm:$0xf] }
 0x21a   : > { %4201 = vmatprep.mubr.msk.bf16.mxu0 %vm848_vm6, %v5368_v31  ;;  %v5870_v31 = vld [vmem:[#allocation2_spill] sm:$0xff] }
 0x21f   : > { %4310 = vmatmul.mubr.msk.bf16.gmra.mrb[24].mxu1 %vm848_vm6, %v5260_v54 }
 0x220   : > { %4315 = vmatprep.mubr.msk.bf16.mxu1 %vm848_vm6, %v5383_v17  ;;  %v5871_v17 = vld [vmem:[#allocation3_spill] sm:$0xff] }
 0x221   : > { %4202 = vmatmul.mubr.msk.bf16.vlgmr.msra.gmra.mrb[84].mxu0 %vm848_vm6, %v5373_v63  ;;  %v3190_v63 = vsel %vm903_vm4, %v3778_v28, 0 }
 0x222   : > { %4205 = vmatprep.mubr.msk.bf16.mxu0 %vm848_vm6, %v5398_v30  ;;  %v5874_v30 = vld [vmem:[#allocation6_spill] sm:$0xff] }
 0x227   : > { %4316 = vmatmul.mubr.msk.bf16.vlgmr.msra.gmra.mrb[28].mxu1 %vm848_vm6, %v5393_v26  ;;  %v5873_v26 = vld [vmem:[#allocation5_spill] sm:$0xff] }
 0x228   : > { %4352 = vmatpush3.bf16.msra.mxu1 %v2880_v36  ;;  %4319 = vmatprep.mubr.msk.bf16.mxu1 %vm848_vm6, %v2219_v60  ;;  %v5878_v60 = vld [vmem:[#allocation14_spill] sm:$0xff] }
 0x229   : > { %4206 = vmatmul.mubr.msk.bf16.gmra.mrb[88].mxu0 %vm848_vm6, %v5405_v51  ;;  %4726 = vmatprep.subr.msk.bf16.mxu1 %vm903_vm4, %v3778_v28  ;;  %v5877_v51 = vld [vmem:[#allocation12_spill] sm:$0xff]  ;;  %v3118_v28 = vsel %vm3097_vm11, %v3115_v58, %v3117_v34 }
 0x22f   : > { %4320 = vmatmul.mubr.msk.bf16.gmra.mrb[32].mxu1 %vm848_vm6, %v2221_v41  ;;  %v5879_v41 = vld [vmem:[#allocation16_spill] sm:$0xff] }
 0x230   : > { %4323 = vmatprep.mubr.msk.bf16.mxu1 %vm848_vm6, %v2223_v22  ;;  %v5880_v22 = vld [vmem:[#allocation18_spill] sm:$0xff] }
 0x237   : > { %4324 = vmatmul.mubr.msk.bf16.gmra.mrb[0].mxu1 %vm848_vm6, %v2225_v37  ;;  %v5881_v37 = vld [vmem:[#allocation20_spill] sm:$0xff] }
 0x238   : > { %4327 = vmatprep.mubr.msk.bf16.mxu1 %vm848_vm6, %v2227_v57  ;;  %v5883_v57 = vld [vmem:[#allocation24_spill] sm:$0xff] }
 0x23f   : > { %4328 = vmatmul.mubr.msk.bf16.gmra.mrb[4].mxu1 %vm848_vm6, %v2229_v39  ;;  %v5884_v39 = vld [vmem:[#allocation26_spill] sm:$0xff] }
 0x240   : > { %4331 = vmatprep.mubr.msk.bf16.mxu1 %vm848_vm6, %v2231_v29  ;;  %v3101_v29 = vrot.slane %v4966_v44, 3 }
 0x242   : > { %v3102_v2 = vsel %vm3097_vm11, %v3099_v4, %v3101_v29 }
 0x247   : > { %4332 = vmatmul.mubr.msk.bf16.gmra.mrb[8].mxu1 %vm848_vm6, %v2233_v45  ;;  %v3103_v45 = vrot.slane %v4978_v0, 3 }
 0x248   : > { %4335 = vmatprep.mubr.msk.bf16.mxu1 %vm848_vm6, %v2235_v21 }
 0x249   : > { %v3106_v44 = vsel %vm3097_vm11, %v3103_v45, %v3105_v1  ;;  %v5669_v1 = vld [vmem:[%s5818_s3] ss:$0 sm:$0xff] }
 0x24f   : > { %4336 = vmatmul.mubr.msk.bf16.gmra.mrb[12].mxu1 %vm848_vm6, %v2237_v59 }
 0x250   : > { %4339 = vmatprep.mubr.msk.bf16.mxu1 %vm848_vm6, %v2239_v12 }
 0x257   : > { %4340 = vmatmul.mubr.msk.bf16.gmra.mrb[16].mxu1 %vm848_vm6, %v2241_v61 }
 0x258   : > { %4343 = vmatprep.mubr.msk.bf16.mxu1 %vm848_vm6, %v2243_v27  ;;  %v3116_v27 = vsel %vm3097_vm11, %v3113_v18, %v3115_v58 }
 0x25f   : > { %4344 = vmatmul.mubr.msk.bf16.gmra.mrb[20].mxu1 %vm848_vm6, %v2245_v38 }
 0x260   : > { %4347 = vmatprep.mubr.msk.bf16.mxu1 %vm848_vm6, %v5260_v54  ;;  %v5875_v54 = vld [vmem:[#allocation8_spill] sm:$0xff] }
 0x267   : > { %4348 = vmatmul.mubr.msk.bf16.gmra.mrb[24].mxu1 %vm848_vm6, %v5280_v16  ;;  %v5876_v16 = vld [vmem:[#allocation10_spill] sm:$0xff] }
 0x268   : > { %4353 = vmatprep.mubr.msk.bf16.mxu1 %vm848_vm6, %v5870_v31 }
 0x26f   : > { %4354 = vmatmul.mubr.msk.bf16.vlgmr.msra.gmra.mrb[28].mxu1 %vm848_vm6, %v5871_v17 }
 0x270   : > { %4390 = vmatpush3.bf16.msra.mxu1 %v3190_v63  ;;  %4357 = vmatprep.mubr.msk.bf16.mxu1 %vm848_vm6, %v5872_v23  ;;  %v3120_v63 = vsel %vm3097_vm11, %v3117_v34, %v3119_v33 }
 0x277   : > { %4358 = vmatmul.mubr.msk.bf16.gmra.mrb[32].mxu1 %vm848_vm6, %v5873_v26 }
 0x278   : > { %4361 = vmatprep.mubr.msk.bf16.mxu1 %vm848_vm6, %v5874_v30  ;;  %v3122_v30 = vsel %vm3097_vm11, %v3119_v33, %v3121_v5 }
 0x27f   : > { %4362 = vmatmul.mubr.msk.bf16.gmra.mrb[0].mxu1 %vm848_vm6, %v5875_v54 }
 0x280   : > { %4365 = vmatprep.mubr.msk.bf16.mxu1 %vm848_vm6, %v5876_v16  ;;  %v3124_v16 = vsel %vm3097_vm11, %v3121_v5, %v3123_v9 }
 0x287   : > { %4366 = vmatmul.mubr.msk.bf16.gmra.mrb[4].mxu1 %vm848_vm6, %v5877_v51 }
 0x288   : > { %4369 = vmatprep.mubr.msk.bf16.mxu1 %vm848_vm6, %v5878_v60 }
 0x28f   : > { %4370 = vmatmul.mubr.msk.bf16.gmra.mrb[8].mxu1 %vm848_vm6, %v5879_v41 }
 0x290   : > { %4373 = vmatprep.mubr.msk.bf16.mxu1 %vm848_vm6, %v5880_v22  ;;  %v3126_v22 = vsel %vm3097_vm11, %v3123_v9, %v3125_v11 }
 0x297   : > { %4374 = vmatmul.mubr.msk.bf16.gmra.mrb[12].mxu1 %vm848_vm6, %v5881_v37 }
 0x298   : > { %4377 = vmatprep.mubr.msk.bf16.mxu1 %vm848_vm6, %v5882_v3  ;;  %v3128_v3 = vsel %vm3097_vm11, %v3125_v11, %v3127_v62 }
 0x29f   : > { %4378 = vmatmul.mubr.msk.bf16.gmra.mrb[16].mxu1 %vm848_vm6, %v5883_v57 }
 0x2a0   : > { %4381 = vmatprep.mubr.msk.bf16.mxu1 %vm848_vm6, %v5884_v39  ;;  %v3130_v39 = vsel %vm3097_vm11, %v3127_v62, %v3129_v32 }
 0x2a7   : > { %4382 = vmatmul.mubr.msk.bf16.gmra.mrb[20].mxu1 %vm848_vm6, %v5885_v7 }
 0x2a8   : > { %4385 = vmatprep.mubr.msk.bf16.mxu1 %vm848_vm6, %v5277_v20  ;;  %v3104_v20 = vsel %vm3097_vm11, %v3101_v29, %v3103_v45 }
 0x2af   : > { %4386 = vmatmul.mubr.msk.bf16.gmra.mrb[24].mxu1 %vm848_vm6, %v5295_v46 }
 0x2b0   : > { %4391 = vmatprep.mubr.msk.bf16.mxu1 %vm848_vm6, %v3100_v49 }
 0x2b7   : > { %4392 = vmatmul.mubr.msk.bf16.vlgmr.msra.gmra.mrb[28].mxu1 %vm848_vm6, %v3102_v2 }
 0x2b8   : > { %4395 = vmatprep.mubr.msk.bf16.mxu1 %vm848_vm6, %v3104_v20 }
 0x2bc   : > { %v5567_v46 = vpop.f32.mrb[92].mxu0 }
 0x2bd   : > { %v5569_v25 = vpop.f32.mrb[93].mxu0 }
 0x2be   : > { %v5571_v56 = vpop.f32.mrb[94].mxu0 }
 0x2bf   : > { %v5574_v0 = vpop.f32.mrb[95].mxu0  ;;  %4396 = vmatmul.mubr.msk.bf16.gmra.mrb[32].mxu1 %vm848_vm6, %v3106_v44 }
 0x2c0   : > { %4399 = vmatprep.mubr.msk.bf16.mxu1 %vm848_vm6, %v3108_v6 }
 0x2c4   : > { %v5581_v21 = vpop.f32.mrb[96].mxu0 }
 0x2c5   : > { %v5583_v59 = vpop.f32.mrb[97].mxu0 }
 0x2c6   : > { %v5585_v40 = vpop.f32.mrb[98].mxu0 }
 0x2c7   : > { %v5588_v50 = vpop.f32.mrb[99].mxu0  ;;  %4400 = vmatmul.mubr.msk.bf16.gmra.mrb[0].mxu1 %vm848_vm6, %v3110_v48 }
 0x2c8   : > { %4403 = vmatprep.mubr.msk.bf16.mxu1 %vm848_vm6, %v3112_v15 }
 0x2cc   : > { %v5595_v12 = vpop.f32.mrb[100].mxu0 }
 0x2cd   : > { %v5597_v61 = vpop.f32.mrb[101].mxu0 }
 0x2ce   : > { %v5599_v52 = vpop.f32.mrb[102].mxu0 }
 0x2cf   : > { %v5602_v14 = vpop.f32.mrb[103].mxu0  ;;  %4404 = vmatmul.mubr.msk.bf16.gmra.mrb[4].mxu1 %vm848_vm6, %v3114_v10 }
 0x2d0   : > { %4407 = vmatprep.mubr.msk.bf16.mxu1 %vm848_vm6, %v3116_v27 }
 0x2d4   : > { %v5609_v53 = vpop.f32.mrb[104].mxu0 }
 0x2d5   : > { %v5611_v38 = vpop.f32.mrb[105].mxu0 }
 0x2d6   : > { %v5613_v36 = vpop.f32.mrb[106].mxu0 }
 0x2d7   : > { %v5616_v31 = vpop.f32.mrb[107].mxu0  ;;  %4408 = vmatmul.mubr.msk.bf16.gmra.mrb[8].mxu1 %vm848_vm6, %v3118_v28 }
 0x2d8   : > { %4411 = vmatprep.mubr.msk.bf16.mxu1 %vm848_vm6, %v3120_v63 }
 0x2dc   : > { %v5623_v17 = vpop.f32.mrb[108].mxu0 }
 0x2dd   : > { %v5625_v23 = vpop.f32.mrb[109].mxu0 }
 0x2de   : > { %v5627_v26 = vpop.f32.mrb[110].mxu0 }
 0x2df   : > { %v5630_v54 = vpop.f32.mrb[111].mxu0  ;;  %4412 = vmatmul.mubr.msk.bf16.gmra.mrb[12].mxu1 %vm848_vm6, %v3122_v30 }
 0x2e0   : > { %4415 = vmatprep.mubr.msk.bf16.mxu1 %vm848_vm6, %v3124_v16 }
 0x2e4   : > { %v5637_v51 = vpop.f32.mrb[112].mxu0 }
 0x2e5   : > { %v5639_v60 = vpop.f32.mrb[113].mxu0 }
 0x2e6   : > { %v5641_v41 = vpop.f32.mrb[114].mxu0 }
 0x2e7   : > { %v5644_v37 = vpop.f32.mrb[115].mxu0  ;;  %4416 = vmatmul.mubr.msk.bf16.gmra.mrb[16].mxu1 %vm848_vm6, %v3126_v22 }
 0x2e8   : > { %4419 = vmatprep.mubr.msk.bf16.mxu1 %vm848_vm6, %v3128_v3 }
 0x2ec   : > { %v5649_v57 = vpop.f32.mrb[116].mxu0 }
 0x2ed   : > { %v5651_v43 = vpop.f32.mrb[117].mxu0 }
 0x2ee   : > { %v5653_v42 = vpop.f32.mrb[118].mxu0 }
 0x2ef   : > { %v5658_v7 = vpop.f32.mrb[119].mxu0  ;;  %4420 = vmatmul.mubr.msk.bf16.gmra.mrb[20].mxu1 %vm848_vm6, %v3130_v39 }
 0x2f0   : > { %4423 = vmatprep.mubr.msk.bf16.mxu1 %vm848_vm6, %v5265_v35 }
 0x2f4   : > { %v4203_v4 = vpop.f32.mrb[84].mxu0 }
 0x2f5   : > { %v1674_v13 = vpop.f32.mrb[85].mxu0 }
 0x2f6   : > { %v4204_v49 = vpop.f32.mrb[86].mxu0 }
 0x2f7   : > { %v1677_v29 = vpop.f32.mrb[87].mxu0  ;;  %4424 = vmatmul.mubr.msk.bf16.gmra.mrb[24].mxu1 %vm848_vm6, %v5285_v8 }
 0x2fc   : > { %v4207_v45 = vpop.f32.mrb[88].mxu0 }
 0x2fd   : > { %v1690_v2 = vpop.f32.mrb[89].mxu0 }
 0x2fe   : > { %v4208_v20 = vpop.f32.mrb[90].mxu0 }
 0x2ff   : > { %v1693_v47 = vpop.f32.mrb[91].mxu0 }
 0x38a   : > { %v4393_v32 = vpop.f32.mrb[28].mxu1 }
 0x38b   : > { %v4429_v19 = vadd.f32 %v4393_v32, %v4203_v4  ;;  %v3226_v35 = vpop.f32.mrb[29].mxu1 }
 0x38c   : > { %v4430_v44 = vadd.f32 %v3226_v35, %v1674_v13  ;;  %v4394_v6 = vpop.f32.mrb[30].mxu1 }
 0x38d   : > { %v3414_v24 = vadd.f32 %v4429_v19, %v5669_v1  ;;  %v4431_v55 = vadd.f32 %v4394_v6, %v4204_v49  ;;  %v3229_v48 = vpop.f32.mrb[31].mxu1 }
 0x38e   : > { %v3412_v8 = vadd.f32 %v4430_v44, %v5669_v1  ;;  %v4432_v15 = vadd.f32 %v3229_v48, %v1677_v29 }
 0x38f   : > { %v3450_v18 = vmax.f32 %v3414_v24, 0.0  ;;  %v3415_v58 = vadd.f32 %v4431_v55, %v5669_v1 }
 0x390   : > { %v3448_v10 = vmax.f32 %v3412_v8, 0.0  ;;  %v3413_v27 = vadd.f32 %v4432_v15, %v5669_v1 }
 0x391   : > { %3486 = vst.msk [vmem:[%s5675_s26 + $0x10] sm:$0xff] %vm848_vm6, %v3450_v18  ;;  %v3451_v34 = vmax.f32 %v3415_v58, 0.0 }
 0x392   : > { %3484 = vst.msk [vmem:[%s5675_s26] sm:$0xff] %vm848_vm6, %v3448_v10  ;;  %v3449_v33 = vmax.f32 %v3413_v27, 0.0  ;;  %v4397_v28 = vpop.f32.mrb[32].mxu1 }
 0x393   : > { %3487 = vst.msk [vmem:[%s5675_s26 + $0x18] sm:$0xff] %vm848_vm6, %v3451_v34  ;;  %v4433_v63 = vadd.f32 %v4397_v28, %v4207_v45  ;;  %v3242_v5 = vpop.f32.mrb[33].mxu1 }
 0x394   : > { %3485 = vst.msk [vmem:[%s5675_s26 + $0x8] sm:$0xff] %vm848_vm6, %v3449_v33  ;;  %v4434_v9 = vadd.f32 %v3242_v5, %v1690_v2  ;;  %v4398_v30 = vpop.f32.mrb[34].mxu1 }
 0x395   : > { %v3418_v16 = vadd.f32 %v4433_v63, %v5669_v1  ;;  %v4435_v11 = vadd.f32 %v4398_v30, %v4208_v20  ;;  %v3245_v62 = vpop.f32.mrb[35].mxu1 }
 0x396   : > { %v3416_v22 = vadd.f32 %v4434_v9, %v5669_v1  ;;  %v4436_v3 = vadd.f32 %v3245_v62, %v1693_v47 }
 0x397   : > { %v3454_v39 = vmax.f32 %v3418_v16, 0.0  ;;  %v3419_v4 = vadd.f32 %v4435_v11, %v5669_v1 }
 0x398   : > { %v3452_v13 = vmax.f32 %v3416_v22, 0.0  ;;  %v3417_v49 = vadd.f32 %v4436_v3, %v5669_v1 }
 0x399   : > { %3490 = vst.msk [vmem:[%s5675_s26 + $0x30] sm:$0xff] %vm848_vm6, %v3454_v39  ;;  %v3455_v29 = vmax.f32 %v3419_v4, 0.0 }
 0x39a   : > { %3488 = vst.msk [vmem:[%s5675_s26 + $0x20] sm:$0xff] %vm848_vm6, %v3452_v13  ;;  %v3453_v45 = vmax.f32 %v3417_v49, 0.0  ;;  %v4401_v2 = vpop.f32.mrb[0].mxu1 }
 0x39b   : > { %3491 = vst.msk [vmem:[%s5675_s26 + $0x38] sm:$0xff] %vm848_vm6, %v3455_v29  ;;  %v4437_v20 = vadd.f32 %v4401_v2, %v5567_v46  ;;  %v3258_v47 = vpop.f32.mrb[1].mxu1 }
 0x39c   : > { %3489 = vst.msk [vmem:[%s5675_s26 + $0x28] sm:$0xff] %vm848_vm6, %v3453_v45  ;;  %v4438_v32 = vadd.f32 %v3258_v47, %v5569_v25  ;;  %v4402_v19 = vpop.f32.mrb[2].mxu1 }
 0x39d   : > { %v3422_v35 = vadd.f32 %v4437_v20, %v5669_v1  ;;  %v4439_v44 = vadd.f32 %v4402_v19, %v5571_v56  ;;  %v3261_v6 = vpop.f32.mrb[3].mxu1 }
 0x39e   : > { %v3420_v24 = vadd.f32 %v4438_v32, %v5669_v1  ;;  %v4440_v55 = vadd.f32 %v3261_v6, %v5574_v0 }
 0x39f   : > { %v3458_v48 = vmax.f32 %v3422_v35, 0.0  ;;  %v3423_v46 = vadd.f32 %v4439_v44, %v5669_v1 }
 0x3a0   : > { %v3456_v8 = vmax.f32 %v3420_v24, 0.0  ;;  %v3421_v15 = vadd.f32 %v4440_v55, %v5669_v1 }
 0x3a1   : > { %3494 = vst.msk [vmem:[%s5675_s26 + $0x50] sm:$0xff] %vm848_vm6, %v3458_v48  ;;  %v3459_v25 = vmax.f32 %v3423_v46, 0.0 }
 0x3a2   : > { %3492 = vst.msk [vmem:[%s5675_s26 + $0x40] sm:$0xff] %vm848_vm6, %v3456_v8  ;;  %v3457_v18 = vmax.f32 %v3421_v15, 0.0  ;;  %v4405_v58 = vpop.f32.mrb[4].mxu1 }
 0x3a3   : > { %3495 = vst.msk [vmem:[%s5675_s26 + $0x58] sm:$0xff] %vm848_vm6, %v3459_v25  ;;  %v4441_v56 = vadd.f32 %v4405_v58, %v5581_v21  ;;  %v3274_v0 = vpop.f32.mrb[5].mxu1 }
 0x3a4   : > { %3493 = vst.msk [vmem:[%s5675_s26 + $0x48] sm:$0xff] %vm848_vm6, %v3457_v18  ;;  %v4442_v10 = vadd.f32 %v3274_v0, %v5583_v59  ;;  %v4406_v27 = vpop.f32.mrb[6].mxu1 }
 0x3a5   : > { %v3426_v34 = vadd.f32 %v4441_v56, %v5669_v1  ;;  %v4443_v33 = vadd.f32 %v4406_v27, %v5585_v40  ;;  %v3277_v28 = vpop.f32.mrb[7].mxu1 }
 0x3a6   : > { %v3424_v63 = vadd.f32 %v4442_v10, %v5669_v1  ;;  %v4444_v5 = vadd.f32 %v3277_v28, %v5588_v50 }
 0x3a7   : > { %v3462_v9 = vmax.f32 %v3426_v34, 0.0  ;;  %v3427_v21 = vadd.f32 %v4443_v33, %v5669_v1 }
 0x3a8   : > { %v3460_v30 = vmax.f32 %v3424_v63, 0.0  ;;  %v3425_v16 = vadd.f32 %v4444_v5, %v5669_v1 }
 0x3a9   : > { %3498 = vst.msk [vmem:[%s5675_s26 + $0x70] sm:$0xff] %vm848_vm6, %v3462_v9  ;;  %v3463_v59 = vmax.f32 %v3427_v21, 0.0 }
 0x3aa   : > { %3496 = vst.msk [vmem:[%s5675_s26 + $0x60] sm:$0xff] %vm848_vm6, %v3460_v30  ;;  %v3461_v11 = vmax.f32 %v3425_v16, 0.0  ;;  %v4409_v62 = vpop.f32.mrb[8].mxu1 }
 0x3ab   : > { %3499 = vst.msk [vmem:[%s5675_s26 + $0x78] sm:$0xff] %vm848_vm6, %v3463_v59  ;;  %v4445_v40 = vadd.f32 %v4409_v62, %v5595_v12  ;;  %v3290_v50 = vpop.f32.mrb[9].mxu1 }
 0x3ac   : > { %3497 = vst.msk [vmem:[%s5675_s26 + $0x68] sm:$0xff] %vm848_vm6, %v3461_v11  ;;  %v4446_v22 = vadd.f32 %v3290_v50, %v5597_v61  ;;  %v4410_v3 = vpop.f32.mrb[10].mxu1 }
 0x3ad   : > { %v3430_v39 = vadd.f32 %v4445_v40, %v5669_v1  ;;  %v4447_v4 = vadd.f32 %v4410_v3, %v5599_v52  ;;  %v3293_v13 = vpop.f32.mrb[11].mxu1 }
 0x3ae   : > { %v3428_v49 = vadd.f32 %v4446_v22, %v5669_v1  ;;  %v4448_v29 = vadd.f32 %v3293_v13, %v5602_v14 }
 0x3af   : > { %v3466_v45 = vmax.f32 %v3430_v39, 0.0  ;;  %v3431_v12 = vadd.f32 %v4447_v4, %v5669_v1 }
 0x3b0   : > { %v3464_v2 = vmax.f32 %v3428_v49, 0.0  ;;  %v3429_v20 = vadd.f32 %v4448_v29, %v5669_v1 }
 0x3b1   : > { %3502 = vst.msk [vmem:[%s5675_s26 + $0x90] sm:$0xff] %vm848_vm6, %v3466_v45  ;;  %v3467_v61 = vmax.f32 %v3431_v12, 0.0 }
 0x3b2   : > { %3500 = vst.msk [vmem:[%s5675_s26 + $0x80] sm:$0xff] %vm848_vm6, %v3464_v2  ;;  %v3465_v47 = vmax.f32 %v3429_v20, 0.0  ;;  %v4413_v32 = vpop.f32.mrb[12].mxu1 }
 0x3b3   : > { %3503 = vst.msk [vmem:[%s5675_s26 + $0x98] sm:$0xff] %vm848_vm6, %v3467_v61  ;;  %v4449_v52 = vadd.f32 %v4413_v32, %v5609_v53  ;;  %v3306_v14 = vpop.f32.mrb[13].mxu1 }
 0x3b4   : > { %3501 = vst.msk [vmem:[%s5675_s26 + $0x88] sm:$0xff] %vm848_vm6, %v3465_v47  ;;  %v4450_v19 = vadd.f32 %v3306_v14, %v5611_v38  ;;  %v4414_v35 = vpop.f32.mrb[14].mxu1 }
 0x3b5   : > { %v3434_v44 = vadd.f32 %v4449_v52, %v5669_v1  ;;  %v4451_v6 = vadd.f32 %v4414_v35, %v5613_v36  ;;  %v3309_v24 = vpop.f32.mrb[15].mxu1 }
 0x3b6   : > { %v3432_v55 = vadd.f32 %v4450_v19, %v5669_v1  ;;  %v4452_v48 = vadd.f32 %v3309_v24, %v5616_v31 }
 0x3b7   : > { %v3470_v46 = vmax.f32 %v3434_v44, 0.0  ;;  %v3435_v53 = vadd.f32 %v4451_v6, %v5669_v1 }
 0x3b8   : > { %v3468_v8 = vmax.f32 %v3432_v55, 0.0  ;;  %v3433_v15 = vadd.f32 %v4452_v48, %v5669_v1 }
 0x3b9   : > { %3506 = vst.msk [vmem:[%s5675_s26 + $0xb0] sm:$0xff] %vm848_vm6, %v3470_v46  ;;  %v3471_v38 = vmax.f32 %v3435_v53, 0.0 }
 0x3ba   : > { %3504 = vst.msk [vmem:[%s5675_s26 + $0xa0] sm:$0xff] %vm848_vm6, %v3468_v8  ;;  %v3469_v25 = vmax.f32 %v3433_v15, 0.0  ;;  %v4417_v18 = vpop.f32.mrb[16].mxu1 }
 0x3bb   : > { %3507 = vst.msk [vmem:[%s5675_s26 + $0xb8] sm:$0xff] %vm848_vm6, %v3471_v38  ;;  %v4453_v36 = vadd.f32 %v4417_v18, %v5623_v17  ;;  %v3322_v31 = vpop.f32.mrb[17].mxu1 }
 0x3bc   : > { %3505 = vst.msk [vmem:[%s5675_s26 + $0xa8] sm:$0xff] %vm848_vm6, %v3469_v25  ;;  %v4454_v58 = vadd.f32 %v3322_v31, %v5625_v23  ;;  %v4418_v56 = vpop.f32.mrb[18].mxu1 }
 0x3bd   : > { %v3438_v0 = vadd.f32 %v4453_v36, %v5669_v1  ;;  %v4455_v10 = vadd.f32 %v4418_v56, %v5627_v26  ;;  %v3325_v27 = vpop.f32.mrb[19].mxu1 }
 0x3be   : > { %v3436_v34 = vadd.f32 %v4454_v58, %v5669_v1  ;;  %v4456_v33 = vadd.f32 %v3325_v27, %v5630_v54 }
 0x3bf   : > { %v3474_v28 = vmax.f32 %v3438_v0, 0.0  ;;  %v3439_v17 = vadd.f32 %v4455_v10, %v5669_v1 }
 0x3c0   : > { %v3472_v63 = vmax.f32 %v3436_v34, 0.0  ;;  %v3437_v5 = vadd.f32 %v4456_v33, %v5669_v1 }
 0x3c1   : > { %3510 = vst.msk [vmem:[%s5675_s26 + $0xd0] sm:$0xff] %vm848_vm6, %v3474_v28  ;;  %v3475_v23 = vmax.f32 %v3439_v17, 0.0 }
 0x3c2   : > { %3508 = vst.msk [vmem:[%s5675_s26 + $0xc0] sm:$0xff] %vm848_vm6, %v3472_v63  ;;  %v3473_v9 = vmax.f32 %v3437_v5, 0.0  ;;  %v4421_v21 = vpop.f32.mrb[20].mxu1 }
 0x3c3   : > { %3511 = vst.msk [vmem:[%s5675_s26 + $0xd8] sm:$0xff] %vm848_vm6, %v3475_v23  ;;  %v4457_v26 = vadd.f32 %v4421_v21, %v5637_v51  ;;  %v3338_v54 = vpop.f32.mrb[21].mxu1 }
 0x3c4   : > { %3509 = vst.msk [vmem:[%s5675_s26 + $0xc8] sm:$0xff] %vm848_vm6, %v3473_v9  ;;  %v4458_v30 = vadd.f32 %v3338_v54, %v5639_v60  ;;  %v4422_v16 = vpop.f32.mrb[22].mxu1 }
 0x3c5   : > { %v3442_v59 = vadd.f32 %v4457_v26, %v5669_v1  ;;  %v4459_v11 = vadd.f32 %v4422_v16, %v5641_v41  ;;  %v3341_v62 = vpop.f32.mrb[23].mxu1 }
 0x3c6   : > { %v3440_v40 = vadd.f32 %v4458_v30, %v5669_v1  ;;  %v4460_v50 = vadd.f32 %v3341_v62, %v5644_v37 }
 0x3c7   : > { %v3478_v22 = vmax.f32 %v3442_v59, 0.0  ;;  %v3443_v51 = vadd.f32 %v4459_v11, %v5669_v1 }
 0x3c8   : > { %v3476_v3 = vmax.f32 %v3440_v40, 0.0  ;;  %v3441_v39 = vadd.f32 %v4460_v50, %v5669_v1 }
 0x3c9   : > { %3514 = vst.msk [vmem:[%s5675_s26 + $0xf0] sm:$0xff] %vm848_vm6, %v3478_v22  ;;  %v3479_v60 = vmax.f32 %v3443_v51, 0.0 }
 0x3ca   : > { %3512 = vst.msk [vmem:[%s5675_s26 + $0xe0] sm:$0xff] %vm848_vm6, %v3476_v3  ;;  %v3477_v4 = vmax.f32 %v3441_v39, 0.0  ;;  %v4425_v13 = vpop.f32.mrb[24].mxu1 }
 0x3cb   : > { %3515 = vst.msk [vmem:[%s5675_s26 + $0xf8] sm:$0xff] %vm848_vm6, %v3479_v60  ;;  %v4461_v41 = vadd.f32 %v4425_v13, %v5649_v57  ;;  %v3354_v37 = vpop.f32.mrb[25].mxu1 }
 0x3cc   : > { %3513 = vst.msk [vmem:[%s5675_s26 + $0xe8] sm:$0xff] %vm848_vm6, %v3477_v4  ;;  %v4462_v49 = vadd.f32 %v3354_v37, %v5651_v43  ;;  %v4426_v29 = vpop.f32.mrb[26].mxu1 }
 0x3cd   : > { %v3446_v45 = vadd.f32 %v4461_v41, %v5669_v1  ;;  %v4463_v12 = vadd.f32 %v4426_v29, %v5653_v42  ;;  %v3357_v2 = vpop.f32.mrb[27].mxu1 }
 0x3ce   : > { %v3444_v20 = vadd.f32 %v4462_v49, %v5669_v1  ;;  %v4464_v61 = vadd.f32 %v3357_v2, %v5658_v7 }
 0x3cf   : > { %v3482_v47 = vmax.f32 %v3446_v45, 0.0  ;;  %v3447_v57 = vadd.f32 %v4463_v12, %v5669_v1 }
 0x3d0   : > { %v3480_v32 = vmax.f32 %v3444_v20, 0.0  ;;  %v3445_v52 = vadd.f32 %v4464_v61, %v5669_v1 }
 0x3d1   : > { %3518 = vst.msk [vmem:[%s5675_s26 + $0x110] sm:$0xff] %vm848_vm6, %v3482_v47  ;;  %v3483_v43 = vmax.f32 %v3447_v57, 0.0 }
 0x3d2   : > { %3516 = vst.msk [vmem:[%s5675_s26 + $0x100] sm:$0xff] %vm848_vm6, %v3480_v32  ;;  %v3481_v14 = vmax.f32 %v3445_v52, 0.0 }
 0x3d3   : > { %3519 = vst.msk [vmem:[%s5675_s26 + $0x118] sm:$0xff] %vm848_vm6, %v3483_v43 }
 0x3d4   : > { %3517 = vst.msk [vmem:[%s5675_s26 + $0x108] sm:$0xff] %vm848_vm6, %v3481_v14 }
 0x3d5 PF: > { %s14_s15 = sadd.s32 1, %s4770_s15  }
 0x3d6   : > { %p11_p4 = scmp.ge.s32.totalorder %s14_s15, 4  }
 0x3d8   :  { %13 = sbr.rel (!%p11_p4) target bundleno = 1 (0x1), region = 74 }

</bundles_post_ra>
